<compile_context>
chip_gen: v7x
topology: tpu7x:2x2x1
jax: 0.10.0
libtpu: 0.0.40
codegen_flags: <defaults>
</compile_context>

<pallas_src>
import math

import jax
import jax.numpy as jnp
import numpy as np
from jax.experimental import pallas as pl
from jax.experimental.pallas import tpu as pltpu


# ---------------------------------------------------------------------------
# elementwise helpers; every operand is a dense (8, chunk) f32 tile
# ---------------------------------------------------------------------------
def _cross(ax, ay, az, bx, by, bz):
    return (ay * bz - az * by, az * bx - ax * bz, ax * by - ay * bx)


def _rotate_vec_by_q(tx, ty, tz, qw, qx, qy, qz):
    # t' = t + 2*qw*(qv x t) + 2*qv x (qv x t)      (pose_utils.rotate_vec_by_q)
    bx, by, bz = _cross(qx, qy, qz, tx, ty, tz)
    cx, cy, cz = _cross(qx, qy, qz, bx, by, bz)
    return (tx + 2.0 * qw * bx + 2.0 * cx,
            ty + 2.0 * qw * by + 2.0 * cy,
            tz + 2.0 * qw * bz + 2.0 * cz)


def _qexp(lx, ly, lz):
    # log-quaternion (3) -> unit quaternion (4)     (pose_utils.qexp_t)
    # rsqrt form: one EUP rsqrt + sin + cos (no sqrt, no reciprocal).
    n2 = lx * lx + ly * ly + lz * lz
    inv_n = jax.lax.rsqrt(jnp.maximum(n2, 1e-16))   # == 1/max(|l|, 1e-8)
    n = n2 * inv_n                                  # == |l|
    s = jnp.sin(n) * inv_n
    return jnp.cos(n), lx * s, ly * s, lz * s


def _qmult(aw, ax, ay, az, bw, bx, by, bz):
    # normalized quaternion product                 (pose_utils.qmult)
    w = aw * bw - (ax * bx + ay * by + az * bz)
    cx, cy, cz = _cross(ax, ay, az, bx, by, bz)
    x = ax * bw + bx * aw + cx
    y = ay * bw + by * aw + cy
    z = az * bw + bz * aw + cz
    rn = jax.lax.rsqrt(w * w + x * x + y * y + z * z + 1e-12)  # eps insurance
    return w * rn, x * rn, y * rn, z * rn


# Taylor coefficients of (asin(x)/x - 1)/x^2 in z = x^2, k = 1..7; the odd
# polynomial is accurate to ~5e-5 absolute on |x| <= 1/sqrt(2).  Pure VPU FMAs.
_C1, _C2, _C3, _C4, _C5, _C6, _C7 = (
    0.16666667, 0.075, 0.044642857, 0.030381944,
    0.022372159, 0.017352764, 0.013964844)


def _asin_poly(x):
    # Estrin-style evaluation: shorter dependent chain than straight Horner.
    z = x * x
    z2 = z * z
    p01 = _C1 + _C2 * z
    p23 = _C3 + _C4 * z
    p45 = _C5 + _C6 * z
    p = p01 + z2 * (p23 + z2 * (p45 + z2 * _C7))
    return x + x * z * p


def _acos_unit(c, v):
    # acos(c) for a unit quaternion with c = qw (clipped) and v = |qv| >= 0.
    # Case split keeps the asin argument within [0, ~1/sqrt(2)] and avoids the
    # (1 - |c|) cancellation of the half-angle form.
    small_c = jnp.abs(c) <= v
    a = jnp.where(small_c, c, v)
    t = _asin_poly(a)
    return jnp.where(small_c, 0.5 * math.pi - t,
                     jnp.where(c >= 0.0, t, math.pi - t))


def _qlog(qw, qx, qy, qz):
    # unit quaternion (4) -> log quaternion (3)     (pose_utils.qlog_t)
    n2 = qx * qx + qy * qy + qz * qz
    inv_n = jax.lax.rsqrt(jnp.maximum(n2, 1e-16))   # == 1/max(|qv|, 1e-8)
    v = n2 * inv_n                                  # == |qv|
    c = jnp.clip(qw, -1.0, 1.0)
    s = _acos_unit(c, v) * inv_n
    return qx * s, qy * s, qz * s


# ---------------------------------------------------------------------------
# Pallas kernel: one lane-chunk of the criterion per grid step.
# Inputs:
#   w_ref (SMEM, (4,) f32): [exp(-sax)/(Na*3), exp(-saq)/(Na*3),
#                            exp(-srx)/(Nv*3), exp(-srq)/(Nv*3)]
#   s_ref (VMEM block (5, 6, 8, chunk) f32), slab axis 0:
#       0: pred_abs, 1: targ_abs, 2: vo pred pose k, 3: vo pred pose k+1,
#       4: targ_vos;   axis 1: component (tx,ty,tz, lx,ly,lz).  Zero padded.
# Output: (8, chunk) weighted residual tile (summed by the wrapper).
# ---------------------------------------------------------------------------
def _criterion_kernel(w_ref, s_ref, out_ref):
    c_abs_t = w_ref[0]
    c_abs_q = w_ref[1]
    c_vo_t = w_ref[2]
    c_vo_q = w_ref[3]

    # ---- pose_utils.calc_vos(): relative pose between consecutive preds ----
    t0x, t0y, t0z = s_ref[2, 0], s_ref[2, 1], s_ref[2, 2]
    l0x, l0y, l0z = s_ref[2, 3], s_ref[2, 4], s_ref[2, 5]
    t1x, t1y, t1z = s_ref[3, 0], s_ref[3, 1], s_ref[3, 2]
    l1x, l1y, l1z = s_ref[3, 3], s_ref[3, 4], s_ref[3, 5]

    q0w, q0x, q0y, q0z = _qexp(l0x, l0y, l0z)
    q1w, q1x, q1y, q1z = _qexp(l1x, l1y, l1z)

    # invert_pose_quaternion(p0) -> conj(q0); compose with p1.
    qiw, qix, qiy, qiz = q0w, -q0x, -q0y, -q0z
    vqw, vqx, vqy, vqz = _qmult(qiw, qix, qiy, qiz, q1w, q1x, q1y, q1z)

    # Fused rotation: vt = R(qi) @ (t1 - t0)   (rotation is linear).
    vtx, vty, vtz = _rotate_vec_by_q(t1x - t0x, t1y - t0y, t1z - t0z,
                                     qiw, qix, qiy, qiz)

    # log map of the relative rotation
    vlx, vly, vlz = _qlog(vqw, vqx, vqy, vqz)

    # ---- VO L1 residuals ----
    vo_t = (jnp.abs(vtx - s_ref[4, 0]) + jnp.abs(vty - s_ref[4, 1])
            + jnp.abs(vtz - s_ref[4, 2]))
    vo_q = (jnp.abs(vlx - s_ref[4, 3]) + jnp.abs(vly - s_ref[4, 4])
            + jnp.abs(vlz - s_ref[4, 5]))
    acc = c_vo_t * vo_t + c_vo_q * vo_q

    # ---- absolute pose L1 residuals (after VO regs are dead) ----
    abs_t = (jnp.abs(s_ref[0, 0] - s_ref[1, 0])
             + jnp.abs(s_ref[0, 1] - s_ref[1, 1])
             + jnp.abs(s_ref[0, 2] - s_ref[1, 2]))
    abs_q = (jnp.abs(s_ref[0, 3] - s_ref[1, 3])
             + jnp.abs(s_ref[0, 4] - s_ref[1, 4])
             + jnp.abs(s_ref[0, 5] - s_ref[1, 5]))

    out_ref[...] = acc + c_abs_t * abs_t + c_abs_q * abs_q


def mapnet_online_criterion(pred, targ, sax=0.0, saq=0.0, srx=0.0, srq=0.0):
    """pred: (N, 2T, 6), targ: (N, 2T-1, 6) -> scalar loss."""
    n, t2, d = pred.shape
    assert d == 6 and t2 % 2 == 0 and targ.shape == (n, t2 - 1, d)
    t = t2 // 2
    assert t >= 2, "VO loss needs at least T=2 poses per group"
    ma = n * t              # absolute-pose rows
    mv = n * (t - 1)        # relative-pose rows

    pred = pred.astype(jnp.float32)
    targ = targ.astype(jnp.float32)

    # wrapper-side slicing (layout plumbing stays out of the kernel)
    pred_abs = pred[:, :t, :].reshape(ma, d)
    targ_abs = targ[:, :t, :].reshape(ma, d)
    pred_vos = pred[:, t:, :]
    p0 = pred_vos[:, :-1, :].reshape(mv, d)
    p1 = pred_vos[:, 1:, :].reshape(mv, d)
    targ_vos = targ[:, t:, :].reshape(mv, d)

    # One fused, component-major, fully lane-dense (5, 6, 8, Lc) slab.  Zero
    # padding contributes exactly 0 to every residual (identity quaternions /
    # zero translations); this relies on the pad value being exactly 0.0.
    chunk = 256
    lc = pl.cdiv(max(ma, mv), 8 * chunk) * chunk
    num_chunks = lc // chunk
    p_elems = 8 * lc

    def padded(x):
        return jnp.pad(x, ((0, p_elems - x.shape[0]), (0, 0)))   # (P, 6)

    slab = jnp.stack([padded(pred_abs), padded(targ_abs),
                      padded(p0), padded(p1), padded(targ_vos)])  # (5, P, 6)
    slab = slab.transpose(0, 2, 1).reshape(5, d, 8, lc)           # (5, 6, 8, Lc)

    # scalar parameter glue (exp / divides) stays host-side / in XLA
    sax = jnp.float32(sax)
    saq = jnp.float32(saq)
    srx = jnp.float32(srx)
    srq = jnp.float32(srq)
    w = jnp.stack([
        jnp.exp(-sax) / jnp.float32(ma * 3),
        jnp.exp(-saq) / jnp.float32(ma * 3),
        jnp.exp(-srx) / jnp.float32(mv * 3),
        jnp.exp(-srq) / jnp.float32(mv * 3),
    ]).astype(jnp.float32)

    out = pl.pallas_call(
        _criterion_kernel,
        out_shape=jax.ShapeDtypeStruct((8, lc), jnp.float32),
        grid=(num_chunks,),
        in_specs=[
            pl.BlockSpec(memory_space=pltpu.MemorySpace.SMEM),
            pl.BlockSpec((5, d, 8, chunk), lambda i: (0, 0, 0, i)),
        ],
        out_specs=pl.BlockSpec((8, chunk), lambda i: (0, i)),
        compiler_params=pltpu.CompilerParams(
            dimension_semantics=("parallel",)),
        cost_estimate=pl.CostEstimate(
            flops=140 * 8 * lc,
            transcendentals=7 * 8 * lc,
            bytes_accessed=(5 * d + 1) * 8 * lc * 4),
    )(w, slab)

    # Tree-reduce of the weighted residual map + the constant s-terms.
    return jnp.sum(out) + (sax + saq + srx + srq)


# ---------------------------------------------------------------------------
# pure-JAX reference (mirrors the PyTorch module + pose_utils) for validation
# ---------------------------------------------------------------------------
def _reference_loss(pred, targ, sax, saq, srx, srq):
    n, t2, d = pred.shape
    t = t2 // 2
    pa = pred[:, :t, :].reshape(-1, d)
    ta = targ[:, :t, :].reshape(-1, d)
    abs_loss = (jnp.exp(-sax) * jnp.mean(jnp.abs(pa[:, :3] - ta[:, :3])) + sax
                + jnp.exp(-saq) * jnp.mean(jnp.abs(pa[:, 3:] - ta[:, 3:])) + saq)

    pv = pred[:, t:, :]
    p0, p1 = pv[:, :-1, :].reshape(-1, d), pv[:, 1:, :].reshape(-1, d)

    def qexp(l):
        nn = jnp.maximum(jnp.linalg.norm(l, axis=-1, keepdims=True), 1e-8)
        return jnp.concatenate([jnp.cos(nn), l * jnp.sin(nn) / nn], axis=-1)

    def rotate(v, q):
        qs, qv = q[:, :1], q[:, 1:]
        b = jnp.cross(qv, v)
        return v + 2.0 * qs * b + 2.0 * jnp.cross(qv, b)

    def qmult(a, b):
        w = a[:, :1] * b[:, :1] - jnp.sum(a[:, 1:] * b[:, 1:], axis=-1, keepdims=True)
        v = a[:, 1:] * b[:, :1] + b[:, 1:] * a[:, :1] + jnp.cross(a[:, 1:], b[:, 1:])
        q = jnp.concatenate([w, v], axis=-1)
        return q / jnp.linalg.norm(q, axis=-1, keepdims=True)

    def qlog(q):
        nn = jnp.maximum(jnp.linalg.norm(q[:, 1:], axis=-1, keepdims=True), 1e-8)
        return q[:, 1:] * jnp.arccos(jnp.clip(q[:, :1], -1.0, 1.0)) / nn

    q0, q1 = qexp(p0[:, 3:]), qexp(p1[:, 3:])
    qi = jnp.concatenate([q0[:, :1], -q0[:, 1:]], axis=-1)
    ti = -rotate(p0[:, :3], qi)
    vq = qmult(qi, q1)
    vt = ti + rotate(p1[:, :3], qi)
    pred_vos = jnp.concatenate([vt, qlog(vq)], axis=-1)

    tv = targ[:, t:, :].reshape(-1, d)
    vo_loss = (jnp.exp(-srx) * jnp.mean(jnp.abs(pred_vos[:, :3] - tv[:, :3])) + srx
               + jnp.exp(-srq) * jnp.mean(jnp.abs(pred_vos[:, 3:] - tv[:, 3:])) + srq)
    return abs_loss + vo_loss


if __name__ == "__main__":
    key = jax.random.PRNGKey(0)
    N, T, D = 2, 4, 6                      # pred: N x 2T x 6, targ: N x (2T-1) x 6
    k1, k2 = jax.random.split(key)
    pred = 0.5 * jax.random.normal(k1, (N, 2 * T, D), dtype=jnp.float32)
    targ = 0.5 * jax.random.normal(k2, (N, 2 * T - 1, D), dtype=jnp.float32)

    # deterministic "parameters" (typical MapNet init values)
    sax, saq, srx, srq = 0.0, -3.0, 0.0, -3.0

    loss = mapnet_online_criterion(pred, targ, sax=sax, saq=saq, srx=srx, srq=srq)
    loss = jax.block_until_ready(loss)

    ref = _reference_loss(pred, targ, sax, saq, srx, srq)
    np.testing.assert_allclose(np.array(loss), np.array(ref), rtol=1e-3, atol=1e-3)

    print("KERNEL_OK")
</pallas_src>

<mosaic_0001>
module attributes {stable_mosaic.version = 11 : i64} {
  func.func @_criterion_kernel(%arg0: i32, %arg1: memref<4xf32, #tpu.memory_space<smem>>, %arg2: memref<5x6x8x256xf32, #tpu.memory_space<vmem>>, %arg3: memref<8x256xf32, #tpu.memory_space<vmem>>) attributes {dimension_semantics = [#tpu.dimension_semantics<parallel>], iteration_bounds = array<i64: 1>, scalar_prefetch = 0 : i64, scratch_operands = 0 : i64, tpu.core_type = #tpu.core_type<tc>, window_params = [{transform_indices = @transform_0, window_bounds = array<i64: 4>}, {transform_indices = @transform_1, window_bounds = array<i64: 5, 6, 8, 256>}, {transform_indices = @transform_2, window_bounds = array<i64: 8, 256>}]} {
    %c0 = arith.constant 0 : index
    %0 = memref.load %arg1[%c0] : memref<4xf32, #tpu.memory_space<smem>>
    %c1 = arith.constant 1 : index
    %1 = memref.load %arg1[%c1] : memref<4xf32, #tpu.memory_space<smem>>
    %c2 = arith.constant 2 : index
    %2 = memref.load %arg1[%c2] : memref<4xf32, #tpu.memory_space<smem>>
    %c3 = arith.constant 3 : index
    %3 = memref.load %arg1[%c3] : memref<4xf32, #tpu.memory_space<smem>>
    %c2_0 = arith.constant 2 : index
    %c0_1 = arith.constant 0 : index
    %c0_2 = arith.constant 0 : index
    %c0_3 = arith.constant 0 : index
    %4 = vector.load %arg2[%c2_0, %c0_1, %c0_2, %c0_3] : memref<5x6x8x256xf32, #tpu.memory_space<vmem>>, vector<1x1x8x256xf32>
    %5 = vector.shape_cast %4 : vector<1x1x8x256xf32> to vector<8x256xf32>
    %c2_4 = arith.constant 2 : index
    %c1_5 = arith.constant 1 : index
    %c0_6 = arith.constant 0 : index
    %c0_7 = arith.constant 0 : index
    %6 = vector.load %arg2[%c2_4, %c1_5, %c0_6, %c0_7] : memref<5x6x8x256xf32, #tpu.memory_space<vmem>>, vector<1x1x8x256xf32>
    %7 = vector.shape_cast %6 : vector<1x1x8x256xf32> to vector<8x256xf32>
    %c2_8 = arith.constant 2 : index
    %c2_9 = arith.constant 2 : index
    %c0_10 = arith.constant 0 : index
    %c0_11 = arith.constant 0 : index
    %8 = vector.load %arg2[%c2_8, %c2_9, %c0_10, %c0_11] : memref<5x6x8x256xf32, #tpu.memory_space<vmem>>, vector<1x1x8x256xf32>
    %9 = vector.shape_cast %8 : vector<1x1x8x256xf32> to vector<8x256xf32>
    %c2_12 = arith.constant 2 : index
    %c3_13 = arith.constant 3 : index
    %c0_14 = arith.constant 0 : index
    %c0_15 = arith.constant 0 : index
    %10 = vector.load %arg2[%c2_12, %c3_13, %c0_14, %c0_15] : memref<5x6x8x256xf32, #tpu.memory_space<vmem>>, vector<1x1x8x256xf32>
    %11 = vector.shape_cast %10 : vector<1x1x8x256xf32> to vector<8x256xf32>
    %c2_16 = arith.constant 2 : index
    %c4 = arith.constant 4 : index
    %c0_17 = arith.constant 0 : index
    %c0_18 = arith.constant 0 : index
    %12 = vector.load %arg2[%c2_16, %c4, %c0_17, %c0_18] : memref<5x6x8x256xf32, #tpu.memory_space<vmem>>, vector<1x1x8x256xf32>
    %13 = vector.shape_cast %12 : vector<1x1x8x256xf32> to vector<8x256xf32>
    %c2_19 = arith.constant 2 : index
    %c5 = arith.constant 5 : index
    %c0_20 = arith.constant 0 : index
    %c0_21 = arith.constant 0 : index
    %14 = vector.load %arg2[%c2_19, %c5, %c0_20, %c0_21] : memref<5x6x8x256xf32, #tpu.memory_space<vmem>>, vector<1x1x8x256xf32>
    %15 = vector.shape_cast %14 : vector<1x1x8x256xf32> to vector<8x256xf32>
    %c3_22 = arith.constant 3 : index
    %c0_23 = arith.constant 0 : index
    %c0_24 = arith.constant 0 : index
    %c0_25 = arith.constant 0 : index
    %16 = vector.load %arg2[%c3_22, %c0_23, %c0_24, %c0_25] : memref<5x6x8x256xf32, #tpu.memory_space<vmem>>, vector<1x1x8x256xf32>
    %17 = vector.shape_cast %16 : vector<1x1x8x256xf32> to vector<8x256xf32>
    %c3_26 = arith.constant 3 : index
    %c1_27 = arith.constant 1 : index
    %c0_28 = arith.constant 0 : index
    %c0_29 = arith.constant 0 : index
    %18 = vector.load %arg2[%c3_26, %c1_27, %c0_28, %c0_29] : memref<5x6x8x256xf32, #tpu.memory_space<vmem>>, vector<1x1x8x256xf32>
    %19 = vector.shape_cast %18 : vector<1x1x8x256xf32> to vector<8x256xf32>
    %c3_30 = arith.constant 3 : index
    %c2_31 = arith.constant 2 : index
    %c0_32 = arith.constant 0 : index
    %c0_33 = arith.constant 0 : index
    %20 = vector.load %arg2[%c3_30, %c2_31, %c0_32, %c0_33] : memref<5x6x8x256xf32, #tpu.memory_space<vmem>>, vector<1x1x8x256xf32>
    %21 = vector.shape_cast %20 : vector<1x1x8x256xf32> to vector<8x256xf32>
    %c3_34 = arith.constant 3 : index
    %c3_35 = arith.constant 3 : index
    %c0_36 = arith.constant 0 : index
    %c0_37 = arith.constant 0 : index
    %22 = vector.load %arg2[%c3_34, %c3_35, %c0_36, %c0_37] : memref<5x6x8x256xf32, #tpu.memory_space<vmem>>, vector<1x1x8x256xf32>
    %23 = vector.shape_cast %22 : vector<1x1x8x256xf32> to vector<8x256xf32>
    %c3_38 = arith.constant 3 : index
    %c4_39 = arith.constant 4 : index
    %c0_40 = arith.constant 0 : index
    %c0_41 = arith.constant 0 : index
    %24 = vector.load %arg2[%c3_38, %c4_39, %c0_40, %c0_41] : memref<5x6x8x256xf32, #tpu.memory_space<vmem>>, vector<1x1x8x256xf32>
    %25 = vector.shape_cast %24 : vector<1x1x8x256xf32> to vector<8x256xf32>
    %c3_42 = arith.constant 3 : index
    %c5_43 = arith.constant 5 : index
    %c0_44 = arith.constant 0 : index
    %c0_45 = arith.constant 0 : index
    %26 = vector.load %arg2[%c3_42, %c5_43, %c0_44, %c0_45] : memref<5x6x8x256xf32, #tpu.memory_space<vmem>>, vector<1x1x8x256xf32>
    %27 = vector.shape_cast %26 : vector<1x1x8x256xf32> to vector<8x256xf32>
    %28 = arith.mulf %11, %11 : vector<8x256xf32>
    %29 = arith.mulf %13, %13 : vector<8x256xf32>
    %30 = arith.addf %28, %29 : vector<8x256xf32>
    %31 = arith.mulf %15, %15 : vector<8x256xf32>
    %32 = arith.addf %30, %31 : vector<8x256xf32>
    %cst = arith.constant 1.000000e-16 : f32
    %33 = vector.broadcast %cst : f32 to vector<8x256xf32>
    %34 = arith.maximumf %32, %33 : vector<8x256xf32>
    %35 = math.rsqrt %34 : vector<8x256xf32>
    %36 = arith.mulf %32, %35 : vector<8x256xf32>
    %37 = math.sin %36 : vector<8x256xf32>
    %38 = arith.mulf %37, %35 : vector<8x256xf32>
    %39 = math.cos %36 : vector<8x256xf32>
    %40 = arith.mulf %11, %38 : vector<8x256xf32>
    %41 = arith.mulf %13, %38 : vector<8x256xf32>
    %42 = arith.mulf %15, %38 : vector<8x256xf32>
    %43 = arith.mulf %23, %23 : vector<8x256xf32>
    %44 = arith.mulf %25, %25 : vector<8x256xf32>
    %45 = arith.addf %43, %44 : vector<8x256xf32>
    %46 = arith.mulf %27, %27 : vector<8x256xf32>
    %47 = arith.addf %45, %46 : vector<8x256xf32>
    %cst_46 = arith.constant 1.000000e-16 : f32
    %48 = vector.broadcast %cst_46 : f32 to vector<8x256xf32>
    %49 = arith.maximumf %47, %48 : vector<8x256xf32>
    %50 = math.rsqrt %49 : vector<8x256xf32>
    %51 = arith.mulf %47, %50 : vector<8x256xf32>
    %52 = math.sin %51 : vector<8x256xf32>
    %53 = arith.mulf %52, %50 : vector<8x256xf32>
    %54 = math.cos %51 : vector<8x256xf32>
    %55 = arith.mulf %23, %53 : vector<8x256xf32>
    %56 = arith.mulf %25, %53 : vector<8x256xf32>
    %57 = arith.mulf %27, %53 : vector<8x256xf32>
    %cst_47 = arith.constant 0.000000e+00 : f32
    %58 = vector.broadcast %cst_47 : f32 to vector<8x256xf32>
    %59 = arith.subf %58, %40 : vector<8x256xf32>
    %cst_48 = arith.constant 0.000000e+00 : f32
    %60 = vector.broadcast %cst_48 : f32 to vector<8x256xf32>
    %61 = arith.subf %60, %41 : vector<8x256xf32>
    %cst_49 = arith.constant 0.000000e+00 : f32
    %62 = vector.broadcast %cst_49 : f32 to vector<8x256xf32>
    %63 = arith.subf %62, %42 : vector<8x256xf32>
    %64 = arith.mulf %39, %54 : vector<8x256xf32>
    %65 = arith.mulf %59, %55 : vector<8x256xf32>
    %66 = arith.mulf %61, %56 : vector<8x256xf32>
    %67 = arith.addf %65, %66 : vector<8x256xf32>
    %68 = arith.mulf %63, %57 : vector<8x256xf32>
    %69 = arith.addf %67, %68 : vector<8x256xf32>
    %70 = arith.subf %64, %69 : vector<8x256xf32>
    %71 = arith.mulf %61, %57 : vector<8x256xf32>
    %72 = arith.mulf %63, %56 : vector<8x256xf32>
    %73 = arith.subf %71, %72 : vector<8x256xf32>
    %74 = arith.mulf %63, %55 : vector<8x256xf32>
    %75 = arith.mulf %59, %57 : vector<8x256xf32>
    %76 = arith.subf %74, %75 : vector<8x256xf32>
    %77 = arith.mulf %59, %56 : vector<8x256xf32>
    %78 = arith.mulf %61, %55 : vector<8x256xf32>
    %79 = arith.subf %77, %78 : vector<8x256xf32>
    %80 = arith.mulf %59, %54 : vector<8x256xf32>
    %81 = arith.mulf %55, %39 : vector<8x256xf32>
    %82 = arith.addf %80, %81 : vector<8x256xf32>
    %83 = arith.addf %82, %73 : vector<8x256xf32>
    %84 = arith.mulf %61, %54 : vector<8x256xf32>
    %85 = arith.mulf %56, %39 : vector<8x256xf32>
    %86 = arith.addf %84, %85 : vector<8x256xf32>
    %87 = arith.addf %86, %76 : vector<8x256xf32>
    %88 = arith.mulf %63, %54 : vector<8x256xf32>
    %89 = arith.mulf %57, %39 : vector<8x256xf32>
    %90 = arith.addf %88, %89 : vector<8x256xf32>
    %91 = arith.addf %90, %79 : vector<8x256xf32>
    %92 = arith.mulf %70, %70 : vector<8x256xf32>
    %93 = arith.mulf %83, %83 : vector<8x256xf32>
    %94 = arith.addf %92, %93 : vector<8x256xf32>
    %95 = arith.mulf %87, %87 : vector<8x256xf32>
    %96 = arith.addf %94, %95 : vector<8x256xf32>
    %97 = arith.mulf %91, %91 : vector<8x256xf32>
    %98 = arith.addf %96, %97 : vector<8x256xf32>
    %cst_50 = arith.constant 9.99999996E-13 : f32
    %99 = vector.broadcast %cst_50 : f32 to vector<8x256xf32>
    %100 = arith.addf %98, %99 : vector<8x256xf32>
    %101 = math.rsqrt %100 : vector<8x256xf32>
    %102 = arith.mulf %70, %101 : vector<8x256xf32>
    %103 = arith.mulf %83, %101 : vector<8x256xf32>
    %104 = arith.mulf %87, %101 : vector<8x256xf32>
    %105 = arith.mulf %91, %101 : vector<8x256xf32>
    %106 = arith.subf %17, %5 : vector<8x256xf32>
    %107 = arith.subf %19, %7 : vector<8x256xf32>
    %108 = arith.subf %21, %9 : vector<8x256xf32>
    %109 = arith.mulf %61, %108 : vector<8x256xf32>
    %110 = arith.mulf %63, %107 : vector<8x256xf32>
    %111 = arith.subf %109, %110 : vector<8x256xf32>
    %112 = arith.mulf %63, %106 : vector<8x256xf32>
    %113 = arith.mulf %59, %108 : vector<8x256xf32>
    %114 = arith.subf %112, %113 : vector<8x256xf32>
    %115 = arith.mulf %59, %107 : vector<8x256xf32>
    %116 = arith.mulf %61, %106 : vector<8x256xf32>
    %117 = arith.subf %115, %116 : vector<8x256xf32>
    %118 = arith.mulf %61, %117 : vector<8x256xf32>
    %119 = arith.mulf %63, %114 : vector<8x256xf32>
    %120 = arith.subf %118, %119 : vector<8x256xf32>
    %121 = arith.mulf %63, %111 : vector<8x256xf32>
    %122 = arith.mulf %59, %117 : vector<8x256xf32>
    %123 = arith.subf %121, %122 : vector<8x256xf32>
    %124 = arith.mulf %59, %114 : vector<8x256xf32>
    %125 = arith.mulf %61, %111 : vector<8x256xf32>
    %126 = arith.subf %124, %125 : vector<8x256xf32>
    %cst_51 = arith.constant 2.000000e+00 : f32
    %127 = vector.broadcast %cst_51 : f32 to vector<8x256xf32>
    %128 = arith.mulf %127, %39 : vector<8x256xf32>
    %129 = arith.mulf %128, %111 : vector<8x256xf32>
    %130 = arith.addf %106, %129 : vector<8x256xf32>
    %cst_52 = arith.constant 2.000000e+00 : f32
    %131 = vector.broadcast %cst_52 : f32 to vector<8x256xf32>
    %132 = arith.mulf %131, %120 : vector<8x256xf32>
    %133 = arith.addf %130, %132 : vector<8x256xf32>
    %cst_53 = arith.constant 2.000000e+00 : f32
    %134 = vector.broadcast %cst_53 : f32 to vector<8x256xf32>
    %135 = arith.mulf %134, %39 : vector<8x256xf32>
    %136 = arith.mulf %135, %114 : vector<8x256xf32>
    %137 = arith.addf %107, %136 : vector<8x256xf32>
    %cst_54 = arith.constant 2.000000e+00 : f32
    %138 = vector.broadcast %cst_54 : f32 to vector<8x256xf32>
    %139 = arith.mulf %138, %123 : vector<8x256xf32>
    %140 = arith.addf %137, %139 : vector<8x256xf32>
    %cst_55 = arith.constant 2.000000e+00 : f32
    %141 = vector.broadcast %cst_55 : f32 to vector<8x256xf32>
    %142 = arith.mulf %141, %39 : vector<8x256xf32>
    %143 = arith.mulf %142, %117 : vector<8x256xf32>
    %144 = arith.addf %108, %143 : vector<8x256xf32>
    %cst_56 = arith.constant 2.000000e+00 : f32
    %145 = vector.broadcast %cst_56 : f32 to vector<8x256xf32>
    %146 = arith.mulf %145, %126 : vector<8x256xf32>
    %147 = arith.addf %144, %146 : vector<8x256xf32>
    %148 = arith.mulf %103, %103 : vector<8x256xf32>
    %149 = arith.mulf %104, %104 : vector<8x256xf32>
    %150 = arith.addf %148, %149 : vector<8x256xf32>
    %151 = arith.mulf %105, %105 : vector<8x256xf32>
    %152 = arith.addf %150, %151 : vector<8x256xf32>
    %cst_57 = arith.constant 1.000000e-16 : f32
    %153 = vector.broadcast %cst_57 : f32 to vector<8x256xf32>
    %154 = arith.maximumf %152, %153 : vector<8x256xf32>
    %155 = math.rsqrt %154 : vector<8x256xf32>
    %156 = arith.mulf %152, %155 : vector<8x256xf32>
    %cst_58 = arith.constant -1.000000e+00 : f32
    %cst_59 = arith.constant 1.000000e+00 : f32
    %157 = vector.broadcast %cst_58 : f32 to vector<8x256xf32>
    %158 = arith.maximumf %157, %102 : vector<8x256xf32>
    %159 = vector.broadcast %cst_59 : f32 to vector<8x256xf32>
    %160 = arith.minimumf %159, %158 : vector<8x256xf32>
    %161 = math.absf %160 : vector<8x256xf32>
    %162 = arith.cmpf ole, %161, %156 : vector<8x256xf32>
    %163 = arith.select %162, %160, %156 : vector<8x256xi1>, vector<8x256xf32>
    %164 = arith.mulf %163, %163 : vector<8x256xf32>
    %165 = arith.mulf %164, %164 : vector<8x256xf32>
    %cst_60 = arith.constant 7.500000e-02 : f32
    %166 = vector.broadcast %cst_60 : f32 to vector<8x256xf32>
    %167 = arith.mulf %166, %164 : vector<8x256xf32>
    %cst_61 = arith.constant 0.166666672 : f32
    %168 = vector.broadcast %cst_61 : f32 to vector<8x256xf32>
    %169 = arith.addf %168, %167 : vector<8x256xf32>
    %cst_62 = arith.constant 0.030381944 : f32
    %170 = vector.broadcast %cst_62 : f32 to vector<8x256xf32>
    %171 = arith.mulf %170, %164 : vector<8x256xf32>
    %cst_63 = arith.constant 0.0446428582 : f32
    %172 = vector.broadcast %cst_63 : f32 to vector<8x256xf32>
    %173 = arith.addf %172, %171 : vector<8x256xf32>
    %cst_64 = arith.constant 0.0173527636 : f32
    %174 = vector.broadcast %cst_64 : f32 to vector<8x256xf32>
    %175 = arith.mulf %174, %164 : vector<8x256xf32>
    %cst_65 = arith.constant 0.0223721582 : f32
    %176 = vector.broadcast %cst_65 : f32 to vector<8x256xf32>
    %177 = arith.addf %176, %175 : vector<8x256xf32>
    %cst_66 = arith.constant 0.0139648439 : f32
    %178 = vector.broadcast %cst_66 : f32 to vector<8x256xf32>
    %179 = arith.mulf %165, %178 : vector<8x256xf32>
    %180 = arith.addf %177, %179 : vector<8x256xf32>
    %181 = arith.mulf %165, %180 : vector<8x256xf32>
    %182 = arith.addf %173, %181 : vector<8x256xf32>
    %183 = arith.mulf %165, %182 : vector<8x256xf32>
    %184 = arith.addf %169, %183 : vector<8x256xf32>
    %185 = arith.mulf %163, %164 : vector<8x256xf32>
    %186 = arith.mulf %185, %184 : vector<8x256xf32>
    %187 = arith.addf %163, %186 : vector<8x256xf32>
    %cst_67 = arith.constant 1.57079637 : f32
    %188 = vector.broadcast %cst_67 : f32 to vector<8x256xf32>
    %189 = arith.subf %188, %187 : vector<8x256xf32>
    %cst_68 = arith.constant 0.000000e+00 : f32
    %190 = vector.broadcast %cst_68 : f32 to vector<8x256xf32>
    %191 = arith.cmpf oge, %160, %190 : vector<8x256xf32>
    %cst_69 = arith.constant 3.14159274 : f32
    %192 = vector.broadcast %cst_69 : f32 to vector<8x256xf32>
    %193 = arith.subf %192, %187 : vector<8x256xf32>
    %194 = arith.select %191, %187, %193 : vector<8x256xi1>, vector<8x256xf32>
    %195 = arith.select %162, %189, %194 : vector<8x256xi1>, vector<8x256xf32>
    %196 = arith.mulf %195, %155 : vector<8x256xf32>
    %197 = arith.mulf %103, %196 : vector<8x256xf32>
    %198 = arith.mulf %104, %196 : vector<8x256xf32>
    %199 = arith.mulf %105, %196 : vector<8x256xf32>
    %c4_70 = arith.constant 4 : index
    %c0_71 = arith.constant 0 : index
    %c0_72 = arith.constant 0 : index
    %c0_73 = arith.constant 0 : index
    %200 = vector.load %arg2[%c4_70, %c0_71, %c0_72, %c0_73] : memref<5x6x8x256xf32, #tpu.memory_space<vmem>>, vector<1x1x8x256xf32>
    %201 = vector.shape_cast %200 : vector<1x1x8x256xf32> to vector<8x256xf32>
    %202 = arith.subf %133, %201 : vector<8x256xf32>
    %203 = math.absf %202 : vector<8x256xf32>
    %c4_74 = arith.constant 4 : index
    %c1_75 = arith.constant 1 : index
    %c0_76 = arith.constant 0 : index
    %c0_77 = arith.constant 0 : index
    %204 = vector.load %arg2[%c4_74, %c1_75, %c0_76, %c0_77] : memref<5x6x8x256xf32, #tpu.memory_space<vmem>>, vector<1x1x8x256xf32>
    %205 = vector.shape_cast %204 : vector<1x1x8x256xf32> to vector<8x256xf32>
    %206 = arith.subf %140, %205 : vector<8x256xf32>
    %207 = math.absf %206 : vector<8x256xf32>
    %208 = arith.addf %203, %207 : vector<8x256xf32>
    %c4_78 = arith.constant 4 : index
    %c2_79 = arith.constant 2 : index
    %c0_80 = arith.constant 0 : index
    %c0_81 = arith.constant 0 : index
    %209 = vector.load %arg2[%c4_78, %c2_79, %c0_80, %c0_81] : memref<5x6x8x256xf32, #tpu.memory_space<vmem>>, vector<1x1x8x256xf32>
    %210 = vector.shape_cast %209 : vector<1x1x8x256xf32> to vector<8x256xf32>
    %211 = arith.subf %147, %210 : vector<8x256xf32>
    %212 = math.absf %211 : vector<8x256xf32>
    %213 = arith.addf %208, %212 : vector<8x256xf32>
    %c4_82 = arith.constant 4 : index
    %c3_83 = arith.constant 3 : index
    %c0_84 = arith.constant 0 : index
    %c0_85 = arith.constant 0 : index
    %214 = vector.load %arg2[%c4_82, %c3_83, %c0_84, %c0_85] : memref<5x6x8x256xf32, #tpu.memory_space<vmem>>, vector<1x1x8x256xf32>
    %215 = vector.shape_cast %214 : vector<1x1x8x256xf32> to vector<8x256xf32>
    %216 = arith.subf %197, %215 : vector<8x256xf32>
    %217 = math.absf %216 : vector<8x256xf32>
    %c4_86 = arith.constant 4 : index
    %c4_87 = arith.constant 4 : index
    %c0_88 = arith.constant 0 : index
    %c0_89 = arith.constant 0 : index
    %218 = vector.load %arg2[%c4_86, %c4_87, %c0_88, %c0_89] : memref<5x6x8x256xf32, #tpu.memory_space<vmem>>, vector<1x1x8x256xf32>
    %219 = vector.shape_cast %218 : vector<1x1x8x256xf32> to vector<8x256xf32>
    %220 = arith.subf %198, %219 : vector<8x256xf32>
    %221 = math.absf %220 : vector<8x256xf32>
    %222 = arith.addf %217, %221 : vector<8x256xf32>
    %c4_90 = arith.constant 4 : index
    %c5_91 = arith.constant 5 : index
    %c0_92 = arith.constant 0 : index
    %c0_93 = arith.constant 0 : index
    %223 = vector.load %arg2[%c4_90, %c5_91, %c0_92, %c0_93] : memref<5x6x8x256xf32, #tpu.memory_space<vmem>>, vector<1x1x8x256xf32>
    %224 = vector.shape_cast %223 : vector<1x1x8x256xf32> to vector<8x256xf32>
    %225 = arith.subf %199, %224 : vector<8x256xf32>
    %226 = math.absf %225 : vector<8x256xf32>
    %227 = arith.addf %222, %226 : vector<8x256xf32>
    %228 = vector.broadcast %2 : f32 to vector<8x256xf32>
    %229 = arith.mulf %228, %213 : vector<8x256xf32>
    %230 = vector.broadcast %3 : f32 to vector<8x256xf32>
    %231 = arith.mulf %230, %227 : vector<8x256xf32>
    %232 = arith.addf %229, %231 : vector<8x256xf32>
    %c0_94 = arith.constant 0 : index
    %c0_95 = arith.constant 0 : index
    %c0_96 = arith.constant 0 : index
    %c0_97 = arith.constant 0 : index
    %233 = vector.load %arg2[%c0_94, %c0_95, %c0_96, %c0_97] : memref<5x6x8x256xf32, #tpu.memory_space<vmem>>, vector<1x1x8x256xf32>
    %234 = vector.shape_cast %233 : vector<1x1x8x256xf32> to vector<8x256xf32>
    %c1_98 = arith.constant 1 : index
    %c0_99 = arith.constant 0 : index
    %c0_100 = arith.constant 0 : index
    %c0_101 = arith.constant 0 : index
    %235 = vector.load %arg2[%c1_98, %c0_99, %c0_100, %c0_101] : memref<5x6x8x256xf32, #tpu.memory_space<vmem>>, vector<1x1x8x256xf32>
    %236 = vector.shape_cast %235 : vector<1x1x8x256xf32> to vector<8x256xf32>
    %237 = arith.subf %234, %236 : vector<8x256xf32>
    %238 = math.absf %237 : vector<8x256xf32>
    %c0_102 = arith.constant 0 : index
    %c1_103 = arith.constant 1 : index
    %c0_104 = arith.constant 0 : index
    %c0_105 = arith.constant 0 : index
    %239 = vector.load %arg2[%c0_102, %c1_103, %c0_104, %c0_105] : memref<5x6x8x256xf32, #tpu.memory_space<vmem>>, vector<1x1x8x256xf32>
    %240 = vector.shape_cast %239 : vector<1x1x8x256xf32> to vector<8x256xf32>
    %c1_106 = arith.constant 1 : index
    %c1_107 = arith.constant 1 : index
    %c0_108 = arith.constant 0 : index
    %c0_109 = arith.constant 0 : index
    %241 = vector.load %arg2[%c1_106, %c1_107, %c0_108, %c0_109] : memref<5x6x8x256xf32, #tpu.memory_space<vmem>>, vector<1x1x8x256xf32>
    %242 = vector.shape_cast %241 : vector<1x1x8x256xf32> to vector<8x256xf32>
    %243 = arith.subf %240, %242 : vector<8x256xf32>
    %244 = math.absf %243 : vector<8x256xf32>
    %245 = arith.addf %238, %244 : vector<8x256xf32>
    %c0_110 = arith.constant 0 : index
    %c2_111 = arith.constant 2 : index
    %c0_112 = arith.constant 0 : index
    %c0_113 = arith.constant 0 : index
    %246 = vector.load %arg2[%c0_110, %c2_111, %c0_112, %c0_113] : memref<5x6x8x256xf32, #tpu.memory_space<vmem>>, vector<1x1x8x256xf32>
    %247 = vector.shape_cast %246 : vector<1x1x8x256xf32> to vector<8x256xf32>
    %c1_114 = arith.constant 1 : index
    %c2_115 = arith.constant 2 : index
    %c0_116 = arith.constant 0 : index
    %c0_117 = arith.constant 0 : index
    %248 = vector.load %arg2[%c1_114, %c2_115, %c0_116, %c0_117] : memref<5x6x8x256xf32, #tpu.memory_space<vmem>>, vector<1x1x8x256xf32>
    %249 = vector.shape_cast %248 : vector<1x1x8x256xf32> to vector<8x256xf32>
    %250 = arith.subf %247, %249 : vector<8x256xf32>
    %251 = math.absf %250 : vector<8x256xf32>
    %252 = arith.addf %245, %251 : vector<8x256xf32>
    %c0_118 = arith.constant 0 : index
    %c3_119 = arith.constant 3 : index
    %c0_120 = arith.constant 0 : index
    %c0_121 = arith.constant 0 : index
    %253 = vector.load %arg2[%c0_118, %c3_119, %c0_120, %c0_121] : memref<5x6x8x256xf32, #tpu.memory_space<vmem>>, vector<1x1x8x256xf32>
    %254 = vector.shape_cast %253 : vector<1x1x8x256xf32> to vector<8x256xf32>
    %c1_122 = arith.constant 1 : index
    %c3_123 = arith.constant 3 : index
    %c0_124 = arith.constant 0 : index
    %c0_125 = arith.constant 0 : index
    %255 = vector.load %arg2[%c1_122, %c3_123, %c0_124, %c0_125] : memref<5x6x8x256xf32, #tpu.memory_space<vmem>>, vector<1x1x8x256xf32>
    %256 = vector.shape_cast %255 : vector<1x1x8x256xf32> to vector<8x256xf32>
    %257 = arith.subf %254, %256 : vector<8x256xf32>
    %258 = math.absf %257 : vector<8x256xf32>
    %c0_126 = arith.constant 0 : index
    %c4_127 = arith.constant 4 : index
    %c0_128 = arith.constant 0 : index
    %c0_129 = arith.constant 0 : index
    %259 = vector.load %arg2[%c0_126, %c4_127, %c0_128, %c0_129] : memref<5x6x8x256xf32, #tpu.memory_space<vmem>>, vector<1x1x8x256xf32>
    %260 = vector.shape_cast %259 : vector<1x1x8x256xf32> to vector<8x256xf32>
    %c1_130 = arith.constant 1 : index
    %c4_131 = arith.constant 4 : index
    %c0_132 = arith.constant 0 : index
    %c0_133 = arith.constant 0 : index
    %261 = vector.load %arg2[%c1_130, %c4_131, %c0_132, %c0_133] : memref<5x6x8x256xf32, #tpu.memory_space<vmem>>, vector<1x1x8x256xf32>
    %262 = vector.shape_cast %261 : vector<1x1x8x256xf32> to vector<8x256xf32>
    %263 = arith.subf %260, %262 : vector<8x256xf32>
    %264 = math.absf %263 : vector<8x256xf32>
    %265 = arith.addf %258, %264 : vector<8x256xf32>
    %c0_134 = arith.constant 0 : index
    %c5_135 = arith.constant 5 : index
    %c0_136 = arith.constant 0 : index
    %c0_137 = arith.constant 0 : index
    %266 = vector.load %arg2[%c0_134, %c5_135, %c0_136, %c0_137] : memref<5x6x8x256xf32, #tpu.memory_space<vmem>>, vector<1x1x8x256xf32>
    %267 = vector.shape_cast %266 : vector<1x1x8x256xf32> to vector<8x256xf32>
    %c1_138 = arith.constant 1 : index
    %c5_139 = arith.constant 5 : index
    %c0_140 = arith.constant 0 : index
    %c0_141 = arith.constant 0 : index
    %268 = vector.load %arg2[%c1_138, %c5_139, %c0_140, %c0_141] : memref<5x6x8x256xf32, #tpu.memory_space<vmem>>, vector<1x1x8x256xf32>
    %269 = vector.shape_cast %268 : vector<1x1x8x256xf32> to vector<8x256xf32>
    %270 = arith.subf %267, %269 : vector<8x256xf32>
    %271 = math.absf %270 : vector<8x256xf32>
    %272 = arith.addf %265, %271 : vector<8x256xf32>
    %273 = vector.broadcast %0 : f32 to vector<8x256xf32>
    %274 = arith.mulf %273, %252 : vector<8x256xf32>
    %275 = arith.addf %232, %274 : vector<8x256xf32>
    %276 = vector.broadcast %1 : f32 to vector<8x256xf32>
    %277 = arith.mulf %276, %272 : vector<8x256xf32>
    %278 = arith.addf %275, %277 : vector<8x256xf32>
    %c0_142 = arith.constant 0 : index
    %c0_143 = arith.constant 0 : index
    %279 = vector.load %arg3[%c0_142, %c0_143] : memref<8x256xf32, #tpu.memory_space<vmem>>, vector<8x256xf32>
    tpu.vector_store %arg3[%c0_142, %c0_143], %278 {strides = array<i32>} : memref<8x256xf32, #tpu.memory_space<vmem>>, vector<8x256xf32>,
    return
  }
  func.func @transform_0(%arg0: i32) -> i32 {
    %c0_i32 = arith.constant 0 : i32
    %c0_i32_0 = arith.constant 0 : i32
    return %c0_i32 : i32
  }
  func.func @transform_1(%arg0: i32) -> (i32, i32, i32, i32) {
    %c0_i32 = arith.constant 0 : i32
    %c0_i32_0 = arith.constant 0 : i32
    %c0_i32_1 = arith.constant 0 : i32
    %c0_i32_2 = arith.constant 0 : i32
    return %c0_i32, %c0_i32_0, %c0_i32_1, %arg0 : i32, i32, i32, i32
  }
  func.func @transform_2(%arg0: i32) -> (i32, i32) {
    %c0_i32 = arith.constant 0 : i32
    %c0_i32_0 = arith.constant 0 : i32
    return %c0_i32, %arg0 : i32, i32
  }
}

</mosaic_0001>

<bundles_post_ra>
// kernel: tpu_custom_call.1
= control target key start
LH: loop header
LB: loop body
LE: loop exit
PB: predicated region body
PF: predicated region fallthrough
CT: control target
= control target key end

     0   :  { %7 = vsyncpa [#allocation5], 0  ;;  %s2258_s0 = inlined_call_operand.hbm [shape: f32[4], index: 0, kind: input, shape index: {}]   ;;  %s2259_s1 = inlined_call_operand.hbm [shape: f32[5,6,8,256], index: 1, kind: input, shape index: {}]   ;;  %s2260_s2 = inlined_call_operand.hbm [shape: f32[8,256], index: 2, kind: output, shape index: {}]  }
   0x1   :  { %8 = vsyncpa [#allocation3], 0 }
   0x2   :  { %9 = vsyncpa [#allocation4], 0  ;;  %s1442_s11 = scalar_lea.hbm %s2258_s0, 16 }
   0x3   :  { %p1443_p0 = scmp.ne.s32.totalorder %s2258_s0, %s1442_s11  ;;  %p1446_p1 = scmp.lt.u32.totalorder %s1442_s11, %s2258_s0 }
   0x5   :  { %p1448_p2 = pnand %p1446_p1, %p1443_p0 }
   0x7   :  { %1451 = shalt.err (!%p1448_p2)
}
   0x8   :  { %s1502_s16 = smov [#allocation2]   ;;  %s1503_s19 = smov [#allocation6]  }
   0x9   :  { %17 = dma.hbm_to_smem %s2258_s0, 16, %s1502_s16, [#allocation5]  }
   0xa   :  { %s23_s20 = sshll.u32 %s1503_s19, 4  ;;  %s1452_s23 = scalar_lea.hbm %s2259_s1, 7680  ;;  %s24_s20 = int_to_ptr.vmem [resolvable:$true] %s23_s20 }
   0xb   :  { %p1453_p3 = scmp.ne.s32.totalorder %s2259_s1, %s1452_s23  ;;  %p1456_p4 = scmp.lt.u32.totalorder %s1452_s23, %s2259_s1 }
   0xd   :  { %p1458_p5 = pnand %p1456_p4, %p1453_p3 }
   0xf   :  { %1461 = shalt.err (!%p1458_p5)
}
  0x10   :  { %s1462_s28 = scalar_lea.vmem %s24_s20, 7680  ;;  %p1467_p7 = scmp.lt.s32.totalorder %s24_s20, %s24_s20 }
  0x11   :  { %p1463_p6 = scmp.ne.s32.totalorder %s24_s20, %s1462_s28  ;;  %p1468_p8 = scmp.lt.s32.totalorder %s1462_s28, %s1462_s28 }
  0x13   :  { %p1469_p9 = por %p1468_p8, %p1467_p7 }
  0x15   :  { %p1470_p10 = pnand %p1469_p9, %p1463_p6 }
  0x17   :  { %1473 = shalt.err (!%p1470_p10)
}
  0x18   :  { %s1504_s0 = smov 256   ;;  %s1505_s29 = smov 16  }
  0x19   :  { %29 = dma.hbm_to_vmem [thread:$0]  %s2259_s1, 7680, %s24_s20, [#allocation3], %s1504_s0, %s1504_s0, %s1505_s29  }
  0x1a   :  { %1496 = dma.done.wait [#allocation5], 16  }
  0x1b   :  { %1497 = vsyncadd [#allocation5], 4294967280 }
  0x1c   :  { %1498 = dma.done.wait [#allocation3], 7680  }
  0x1d   :  { %1499 = vsyncadd [#allocation3], 4294959616 }
  0x1e   :  { %36 = sfence }
  0x1f   :  { %v1552_v0 = vld [vmem:[#allocation6 + $0xf0] sm:$0xff]  ;;  %v1554_v1 = vld [vmem:[#allocation6 + $0xf8] sm:$0xff]  ;;  %v1556_v2 = vld [vmem:[#allocation6 + $0x100] sm:$0xff]  ;;  %s2205_s1 = sld [smem:[#allocation2]]  ;;  %s2207_s4 = sld [smem:[#allocation2 + $0x2]] }
  0x20   :  { %v1558_v3 = vld [vmem:[#allocation6 + $0x108] sm:$0xff]  ;;  %v77_v4 = vmul.f32 %v1552_v0, %v1552_v0  ;;  %v1562_v5 = vld [vmem:[#allocation6 + $0x110] sm:$0xff]  ;;  %v1564_v6 = vld [vmem:[#allocation6 + $0x118] sm:$0xff]  ;;  %v78_v7 = vmul.f32 %v1554_v1, %v1554_v1  ;;  %v79_v8 = vmul.f32 %v1556_v2, %v1556_v2  ;;  %s2211_s5 = sld [smem:[#allocation2 + $0x3]]  ;;  %s2217_s6 = sld [smem:[#allocation2 + $0x1]] }
  0x21   :  { %v80_v9 = vmul.f32 %v1558_v3, %v1558_v3  ;;  %v83_v10 = vmul.f32 %v1562_v5, %v1562_v5  ;;  %v84_v11 = vmul.f32 %v1564_v6, %v1564_v6  ;;  %v69_v12 = vld [vmem:[#allocation6 + $0x150] sm:$0xff]  ;;  %v70_v15 = vld [vmem:[#allocation6 + $0x158] sm:$0xff]  ;;  %v72_v16 = vld [vmem:[#allocation6 + $0x160] sm:$0xff]  ;;  %s1512_s7 = smov [#allocation7]  }
  0x22   :  { %v81_v13 = vadd.f32 %v79_v8, %v77_v4  ;;  %v73_v17 = vld [vmem:[#allocation6 + $0x168] sm:$0xff]  ;;  %v515_v18 = vmul.f32 %v69_v12, %v69_v12  ;;  %v75_v19 = vld [vmem:[#allocation6 + $0x170] sm:$0xff]  ;;  %v76_v20 = vld [vmem:[#allocation6 + $0x178] sm:$0xff]  ;;  %v516_v23 = vmul.f32 %v70_v15, %v70_v15  ;;  %v517_v24 = vmul.f32 %v72_v16, %v72_v16  ;;  %s1330_s8 = sshll.u32 %s1512_s7, 4  ;;  %s1331_s8 = int_to_ptr.vmem [resolvable:$true] %s1330_s8 }
  0x23   :  { %v82_v14 = vadd.f32 %v80_v9, %v78_v7  ;;  %v518_v25 = vmul.f32 %v73_v17, %v73_v17  ;;  %v521_v26 = vmul.f32 %v75_v19, %v75_v19  ;;  %v522_v27 = vmul.f32 %v76_v20, %v76_v20  ;;  %s1474_s9 = scalar_lea.vmem %s1331_s8, 256  ;;  %p1479_p12 = scmp.lt.s32.totalorder %s1331_s8, %s1331_s8 }
  0x24   :  { %v85_v21 = vadd.f32 %v83_v10, %v81_v13  ;;  %v519_v30 = vadd.f32 %v517_v24, %v515_v18  ;;  %v1506_v13 = vmov 683565275   ;;  %v1507_v15 = vmov 2475754826   ;;  %p1475_p11 = scmp.ne.s32.totalorder %s1331_s8, %s1474_s9  ;;  %p1480_p13 = scmp.lt.s32.totalorder %s1474_s9, %s1474_s9 }
  0x25   :  { %v86_v22 = vadd.f32 %v84_v11, %v82_v14  ;;  %v520_v31 = vadd.f32 %v518_v25, %v516_v23  ;;  %v1508_v17 = vmov 2131351028   ;;  %v1509_v19 = vmov 2102212464  }
  0x26   :  { %v87_v28 = vmax.f32 %v85_v21, 1e-16  ;;  %v523_v32 = vadd.f32 %v521_v26, %v519_v30  ;;  %p1481_p0 = por %p1480_p13, %p1479_p12 }
  0x27   :  { %v88_v29 = vmax.f32 %v86_v22, 1e-16  ;;  %v524_v33 = vadd.f32 %v522_v27, %v520_v31 }
  0x28   :  { %1404 = vrsqrt.f32 %v87_v28  ;;  %v525_v34 = vmax.f32 %v523_v32, 1e-16  ;;  %p1482_p1 = pnand %p1481_p0, %p1475_p11 }
  0x29   :  { %1406 = vrsqrt.f32 %v88_v29  ;;  %v526_v35 = vmax.f32 %v524_v33, 1e-16  ;;  %v1511_v29 = vmov 1326507024  }
  0x2a   :  { %1408 = vrsqrt.f32 %v525_v34 }
  0x2b   :  { %1410 = vrsqrt.f32 %v526_v35 }
  0x32   :  { %v1576_v36 = vpop.eup %1404 }
  0x33   :  { %v1578_v37 = vpop.eup %1406  ;;  %v1581_v38 = vmul.f32 %v1576_v36, %v85_v21  ;;  %v1510_v21 = vmov 920167782  }
  0x34   :  { %v1584_v39 = vmul.f32 %v1578_v37, %v86_v22  ;;  %v1588_v42 = vpop.eup %1408 }
  0x35   :  { %v93_v40 = vand.u32 2147483647, %v1581_v38  ;;  %v96_v41 = vand.u32 2139095040, %v1581_v38  ;;  %v1593_v46 = vmul.f32 %v1588_v42, %v523_v32  ;;  %v1600_v53 = vpop.eup %1410  ;;  %vm95_vm14 = vcmp.lt.s32.totalorder %v1581_v38, 0 }
  0x36   :  { %v197_v43 = vand.u32 2147483647, %v1584_v39  ;;  %v200_v44 = vand.u32 2139095040, %v1584_v39  ;;  %v1603_v60 = vmul.f32 %v1600_v53, %v524_v33  ;;  %vm199_vm15 = vcmp.lt.s32.totalorder %v1584_v39, 0 }
  0x37   :  { %v97_v45 = vshrl.u32 %v96_v41, 23  ;;  %v100_v47 = vand.u32 8388607, %v93_v40  ;;  %v534_v52 = vand.u32 2139095040, %v1593_v46  ;;  %v531_v7 = vand.u32 2147483647, %v1593_v46 }
  0x38   :  { %v201_v48 = vshrl.u32 %v200_v44, 23  ;;  %v204_v49 = vand.u32 8388607, %v197_v43  ;;  %vm1685_vm13 = vcmp.le.f32.partialorder %v93_v40, 0.7853982 }
  0x39   :  { %v1343_v50 = vadd.s32 4294967169, %v97_v45  ;;  %v101_v55 = vor.u32 8388608, %v100_v47  ;;  %v535_v58 = vshrl.u32 %v534_v52, 23 }
  0x3a   :  { %v1347_v51 = vadd.s32 4294967169, %v201_v48  ;;  %v205_v56 = vor.u32 8388608, %v204_v49 }
  0x3b   :  { %v103_v54 = vadd.s32 1, %v1343_v50  ;;  %v1359_v61 = vadd.s32 4294967169, %v535_v58  ;;  %v1606_v8 = vshll.u32 %v101_v55, 8 }
  0x3c   :  { %v207_v57 = vadd.s32 1, %v1347_v51  ;;  %v1610_v11 = vshll.u32 %v205_v56, 8 }
  0x3d   :  { %vm104_vm0 = vcmp.gt.s32.totalorder %v103_v54, 0  ;;  %v1617_v23 = vadd.s32 1, %v1359_v61 }
  0x3e   :  { %v105_v59 = vsel %vm104_vm0, %v103_v54, 0  ;;  %vm208_vm1 = vcmp.gt.s32.totalorder %v207_v57, 0 }
  0x3f   :  { %v106_v62 = vshrl.u32 %v105_v59, 5  ;;  %v107_v63 = vand.u32 31, %v105_v59  ;;  %v209_v4 = vsel %vm208_vm1, %v207_v57, 0  ;;  %vm542_vm11 = vcmp.gt.s32.totalorder %v1617_v23, 0 }
  0x40   :  { %v1608_v9 = vshrl.u32 %v209_v4, 5  ;;  %v211_v10 = vand.u32 31, %v209_v4 }
  0x41   :  { %v108_v12 = vsub.s32 32, %v107_v63  ;;  %v110_v14 = vshll.u32 %v1506_v13, %v107_v63  ;;  %v113_v16 = vshll.u32 %v1507_v15, %v107_v63  ;;  %v116_v18 = vshll.u32 %v1508_v17, %v107_v63 }
  0x42   :  { %v119_v20 = vshll.u32 %v1509_v19, %v107_v63  ;;  %v122_v22 = vshll.u32 %v1510_v21, %v107_v63  ;;  %vm125_vm2 = vcmp.lt.s32.totalorder %v106_v62, 1  ;;  %vm126_vm3 = vcmp.lt.s32.totalorder %v106_v62, 2 }
  0x43   :  { %v109_v24 = vshrl.u32 %v1506_v13, %v108_v12  ;;  %v111_v25 = vshrl.u32 %v1507_v15, %v108_v12  ;;  %v114_v26 = vshrl.u32 %v1508_v17, %v108_v12  ;;  %v117_v27 = vshrl.u32 %v1509_v19, %v108_v12 }
  0x44   :  { %v120_v28 = vshrl.u32 %v1510_v21, %v108_v12  ;;  %v123_v30 = vshrl.u32 %v1511_v29, %v108_v12  ;;  %vm128_vm4 = vcmp.lt.s32.totalorder %v106_v62, 4  ;;  %v212_v34 = vsub.s32 32, %v211_v10 }
  0x45   :  { %v112_v31 = vor.u32 %v111_v25, %v110_v14  ;;  %v115_v32 = vor.u32 %v114_v26, %v113_v16  ;;  %v118_v33 = vor.u32 %v117_v27, %v116_v18  ;;  %vm127_vm5 = vcmp.lt.s32.totalorder %v106_v62, 3 }
  0x46   :  { %v121_v35 = vor.u32 %v120_v28, %v119_v20  ;;  %v124_v41 = vor.u32 %v123_v30, %v122_v22  ;;  %v214_v44 = vshll.u32 %v1506_v13, %v211_v10  ;;  %v217_v54 = vshll.u32 %v1507_v15, %v211_v10 }
  0x47   :  { %v129_v45 = vsel %vm125_vm2, %v109_v24, %v112_v31  ;;  %v130_v47 = vsel %vm128_vm4, %v118_v33, 2102212464  ;;  %v133_v48 = vsel %vm125_vm2, %v112_v31, %v115_v32  ;;  %v137_v49 = vsel %vm125_vm2, %v115_v32, %v118_v33 }
  0x48   :  { %v131_v50 = vsel %vm127_vm5, %v115_v32, %v130_v47  ;;  %v134_v51 = vsel %vm128_vm4, %v121_v35, 920167782  ;;  %v138_v52 = vsel %vm128_vm4, %v124_v41, 1326507024  ;;  %v213_v57 = vshrl.u32 %v1506_v13, %v212_v34 }
  0x49   :  { %v135_v55 = vsel %vm127_vm5, %v118_v33, %v134_v51  ;;  %v139_v56 = vsel %vm127_vm5, %v121_v35, %v138_v52  ;;  %v215_v58 = vshrl.u32 %v1507_v15, %v212_v34  ;;  %v132_v59 = vsel %vm126_vm3, %v129_v45, %v131_v50 }
  0x4a   :  { %v136_v61 = vsel %vm126_vm3, %v133_v48, %v135_v55  ;;  %v140_v63 = vsel %vm126_vm3, %v137_v49, %v139_v56  ;;  %v218_v4 = vshrl.u32 %v1508_v17, %v212_v34  ;;  %v220_v24 = vshll.u32 %v1508_v17, %v211_v10 }
  0x4b   :  { %v1637_v12 = vmul.u32.u64.low %v1606_v8, %v140_v63  ;;  %v1638_v14 = vmul.u32.u64.high %v1606_v8, %v140_v63, %v1637_v12  ;;  %v1641_v16 = vmul.u32.u64.low %v1606_v8, %v136_v61  ;;  %v1642_v18 = vmul.u32.u64.high %v1606_v8, %v136_v61, %v1641_v16 }
  0x4c   :  { %v216_v20 = vor.u32 %v215_v58, %v214_v44  ;;  %v219_v22 = vor.u32 %v218_v4, %v217_v54  ;;  %v221_v25 = vshrl.u32 %v1509_v19, %v212_v34  ;;  %v223_v62 = vshll.u32 %v1509_v19, %v211_v10 }
  0x4d   :  { %v224_v26 = vshrl.u32 %v1510_v21, %v212_v34  ;;  %v226_v27 = vshll.u32 %v1510_v21, %v211_v10  ;;  %v227_v28 = vshrl.u32 %v1511_v29, %v212_v34  ;;  %v148_v30 = vmul.u32 %v1606_v8, %v132_v59 }
  0x4e   :  { %v222_v31 = vor.u32 %v221_v25, %v220_v24  ;;  %vm229_vm6 = vcmp.lt.s32.totalorder %v1608_v9, 1  ;;  %vm230_vm7 = vcmp.lt.s32.totalorder %v1608_v9, 2  ;;  %vm150_vm8 = vc.u32 %v1638_v14, %v1641_v16 }
  0x4f   :  { %v151_v32 = vadd.s32 1, %v1642_v18  ;;  %v225_v33 = vor.u32 %v224_v26, %v223_v62  ;;  %vm231_vm9 = vcmp.lt.s32.totalorder %v1608_v9, 3  ;;  %v228_v35 = vor.u32 %v227_v28, %v226_v27 }
  0x50   :  { %vm232_vm10 = vcmp.lt.s32.totalorder %v1608_v9, 4  ;;  %v233_v10 = vsel %vm229_vm6, %v213_v57, %v216_v20  ;;  %v237_v34 = vsel %vm229_vm6, %v216_v20, %v219_v22  ;;  %v241_v45 = vsel %vm229_vm6, %v219_v22, %v222_v31 }
  0x51   :  { %v152_v8 = vsel %vm150_vm8, %v151_v32, %v1642_v18  ;;  %v234_v41 = vsel %vm232_vm10, %v222_v31, 2102212464  ;;  %v238_v44 = vsel %vm232_vm10, %v225_v33, 920167782  ;;  %v242_v50 = vsel %vm232_vm10, %v228_v35, 1326507024 }
  0x52   :  { %v153_v47 = vadd.s32 %v152_v8, %v148_v30  ;;  %v235_v48 = vsel %vm231_vm9, %v219_v22, %v234_v41  ;;  %v239_v49 = vsel %vm231_vm9, %v222_v31, %v238_v44  ;;  %v243_v54 = vsel %vm231_vm9, %v225_v33, %v242_v50 }
  0x53   :  { %v236_v51 = vsel %vm230_vm7, %v233_v10, %v235_v48  ;;  %v240_v52 = vsel %vm230_vm7, %v237_v34, %v239_v49  ;;  %v244_v56 = vsel %vm230_vm7, %v241_v45, %v243_v54  ;;  %v543_v4 = vsel %vm542_vm11, %v1617_v23, 0 }
  0x54   :  { %v154_v55 = vadd.s32 536870912, %v153_v47  ;;  %v1668_v57 = vmul.u32.u64.low %v1610_v11, %v240_v52  ;;  %v1669_v58 = vmul.u32.u64.high %v1610_v11, %v240_v52, %v1668_v57  ;;  %v252_v12 = vmul.u32 %v1610_v11, %v236_v51 }
  0x55   :  { %v1672_v59 = vmul.u32.u64.low %v1610_v11, %v244_v56  ;;  %v1673_v61 = vmul.u32.u64.high %v1610_v11, %v244_v56, %v1672_v59  ;;  %v538_v18 = vand.u32 8388607, %v531_v7  ;;  %v638_v22 = vand.u32 2139095040, %v1603_v60 }
  0x56   :  { %v155_v63 = vshrl.u32 %v154_v55, 30  ;;  %v255_v9 = vadd.s32 1, %v1669_v58  ;;  %v545_v24 = vand.u32 31, %v543_v4  ;;  %v635_v35 = vand.u32 2147483647, %v1603_v60 }
  0x57   :  { %vm254_vm12 = vc.u32 %v1673_v61, %v1668_v57  ;;  %v539_v27 = vor.u32 8388608, %v538_v18  ;;  %v639_v23 = vshrl.u32 %v638_v22, 23  ;;  %v149_v10 = vadd.s32 %v1641_v16, %v1638_v14 }
  0x58   :  { %v156_v20 = vshll.u32 %v155_v63, 30  ;;  %v256_v62 = vsel %vm254_vm12, %v255_v9, %v1669_v58  ;;  %v179_v30 = vsub.s32 4, %v155_v63  ;;  %v546_v31 = vsub.s32 32, %v545_v24 }
  0x59   :  { %v257_v26 = vadd.s32 %v256_v62, %v252_v12  ;;  %v1693_v8 = vshrl.u32 %v543_v4, 5  ;;  %v1695_v41 = vshll.u32 %v539_v27, 8  ;;  %v548_v45 = vshll.u32 %v1506_v13, %v545_v24 }
  0x5a   :  { %v157_v25 = vsub.s32 %v153_v47, %v156_v20  ;;  %v551_v40 = vshll.u32 %v1507_v15, %v545_v24  ;;  %v1363_v47 = vadd.s32 4294967169, %v639_v23  ;;  %v180_v48 = vsel %vm95_vm14, %v179_v30, %v155_v63 }
  0x5b   :  { %v258_v11 = vadd.s32 536870912, %v257_v26  ;;  %v549_v50 = vshrl.u32 %v1507_v15, %v546_v31  ;;  %v552_v14 = vshrl.u32 %v1508_v17, %v546_v31  ;;  %v253_v51 = vadd.s32 %v1668_v57, %v1673_v61 }
  0x5c   :  { %v159_v28 = vsub.s32 0, %v157_v25  ;;  %v547_v52 = vshrl.u32 %v1506_v13, %v546_v31  ;;  %v554_v54 = vshll.u32 %v1508_v17, %v545_v24  ;;  %v555_v56 = vshrl.u32 %v1509_v19, %v546_v31 }
  0x5d   :  { %v259_v34 = vshrl.u32 %v258_v11, 30  ;;  %v557_v58 = vshll.u32 %v1509_v19, %v545_v24  ;;  %v558_v59 = vshrl.u32 %v1510_v21, %v546_v31  ;;  %v182_v63 = vsel %vm1685_vm13, 0, %v180_v48 }
  0x5e   :  { %v1344_v33 = vmin.u32 %v159_v28, %v157_v25  ;;  %v560_v4 = vshll.u32 %v1510_v21, %v545_v24  ;;  %v561_v57 = vshrl.u32 %v1511_v29, %v546_v31  ;;  %v550_v18 = vor.u32 %v549_v50, %v548_v45 }
  0x5f   :  { %v260_v49 = vshll.u32 %v259_v34, 30  ;;  %v553_v20 = vor.u32 %v552_v14, %v551_v40  ;;  %v556_v28 = vor.u32 %v555_v56, %v554_v54  ;;  %v559_v23 = vor.u32 %v558_v59, %v557_v58 }
  0x60   :  { %v161_v44 = vclz %v1344_v33  ;;  %vm563_vm1 = vcmp.lt.s32.totalorder %v1693_v8, 1  ;;  %v562_v24 = vor.u32 %v561_v57, %v560_v4  ;;  %vm566_vm2 = vcmp.lt.s32.totalorder %v1693_v8, 4 }
  0x61   :  { %v1707_v55 = vsub.s32 %v257_v26, %v260_v49  ;;  %v283_v26 = vsub.s32 4, %v259_v34  ;;  %v186_v31 = vadd.s32 3, %v182_v63  ;;  %vm564_vm3 = vcmp.lt.s32.totalorder %v1693_v8, 2 }
  0x62   :  { %v1345_v16 = vadd.s32 4294967294, %v161_v44  ;;  %vm565_vm4 = vcmp.lt.s32.totalorder %v1693_v8, 3  ;;  %vm1724_vm5 = vcmp.le.f32.partialorder %v197_v43, 0.7853982  ;;  %v568_v40 = vsel %vm566_vm2, %v556_v28, 2102212464 }
  0x63   :  { %v263_v12 = vsub.s32 0, %v1707_v55  ;;  %v571_v49 = vsel %vm563_vm1, %v550_v18, %v553_v20  ;;  %v572_v50 = vsel %vm566_vm2, %v559_v23, 920167782  ;;  %v575_v14 = vsel %vm563_vm1, %v553_v20, %v556_v28 }
  0x64   :  { %vm1346_vm0 = vcmp.lt.s32.totalorder %v1345_v16, 0  ;;  %v573_v54 = vsel %vm565_vm4, %v556_v28, %v572_v50  ;;  %v567_v56 = vsel %vm563_vm1, %v547_v52, %v550_v18  ;;  %v569_v58 = vsel %vm565_vm4, %v553_v20, %v568_v40 }
  0x65   :  { %v164_v61 = vsel %vm1346_vm0, 0, %v1345_v16  ;;  %v1348_v27 = vmin.u32 %v263_v12, %v1707_v55  ;;  %v570_v18 = vsel %vm564_vm3, %v567_v56, %v569_v58  ;;  %v1772_v40 = vand.u32 3, %v186_v31 }
  0x66   :  { %v165_v9 = vsub.s32 32, %v164_v61  ;;  %v166_v22 = vshll.u32 %v157_v25, %v164_v61  ;;  %v169_v62 = vsub.s32 4294967266, %v164_v61  ;;  %v574_v61 = vsel %vm564_vm3, %v571_v49, %v573_v54 }
  0x67   :  { %v265_v33 = vclz %v1348_v27  ;;  %vm2261_vm9 = vcmp.lt.s32.totalorder %v1593_v46, 0  ;;  %vm192_vm10 = vcmp.eq.s32.totalorder %v1772_v40, 2  ;;  %vm189_vm11 = vcmp.eq.s32.totalorder %v1772_v40, 0 }
  0x68   :  { %v167_v30 = vshrl.u32 %v149_v10, %v165_v9  ;;  %v170_v11 = vadd.s32 127, %v169_v62  ;;  %v284_v10 = vsel %vm199_vm15, %v283_v26, %v259_v34  ;;  %v576_v34 = vsel %vm566_vm2, %v562_v24, 1326507024 }
  0x69   :  { %v1349_v48 = vadd.s32 4294967294, %v265_v33  ;;  %v577_v59 = vsel %vm565_vm4, %v559_v23, %v576_v34  ;;  %v645_v26 = vadd.s32 1, %v1363_v47  ;;  %v1764_v33 = vand.u32 3, %v182_v63 }
  0x6a   :  { %v168_v25 = vor.u32 %v167_v30, %v166_v22  ;;  %v171_v44 = vshll.u32 %v170_v11, 23  ;;  %v578_v12 = vsel %vm564_vm3, %v575_v14, %v577_v59  ;;  %v642_v47 = vand.u32 8388607, %v635_v35 }
  0x6b   :  { %vm1350_vm6 = vcmp.lt.s32.totalorder %v1349_v48, 0  ;;  %v1756_v20 = vmul.u32.u64.low %v1695_v41, %v578_v12  ;;  %v1757_v27 = vmul.u32.u64.high %v1695_v41, %v578_v12, %v1756_v20  ;;  %vm646_vm7 = vcmp.gt.s32.totalorder %v645_v26, 0 }
  0x6c   :  { %v172_v43 = vor.u32 4788187, %v171_v44  ;;  %v175_v16 = vcvt.s32.f32 %v168_v25  ;;  %v268_v57 = vsel %vm1350_vm6, 0, %v1349_v48  ;;  %v286_v25 = vsel %vm1724_vm5, 0, %v284_v10 }
  0x6d   :  { %v269_v9 = vsub.s32 32, %v268_v57  ;;  %v270_v22 = vshll.u32 %v1707_v55, %v268_v57  ;;  %v273_v62 = vsub.s32 4294967266, %v268_v57  ;;  %v647_v44 = vsel %vm646_vm7, %v645_v26, 0 }
  0x6e   :  { %v173_v4 = vand.u32 2147483647, %v172_v43  ;;  %v1760_v30 = vmul.u32.u64.low %v1695_v41, %v574_v61  ;;  %v1761_v11 = vmul.u32.u64.high %v1695_v41, %v574_v61, %v1760_v30  ;;  %v586_v48 = vmul.u32 %v1695_v41, %v570_v18 }
  0x6f   :  { %v271_v28 = vshrl.u32 %v253_v51, %v269_v9  ;;  %v274_v23 = vadd.s32 127, %v273_v62  ;;  %v290_v10 = vadd.s32 3, %v286_v25  ;;  %v1781_v43 = vand.u32 3, %v286_v25 }
  0x70   :  { %v176_v52 = vmul.f32 %v175_v16, %v173_v4  ;;  %vm588_vm8 = vc.u32 %v1757_v27, %v1760_v30  ;;  %v589_v14 = vadd.s32 1, %v1761_v11  ;;  %v649_v16 = vand.u32 31, %v647_v44 }
  0x71   :  { %v272_v8 = vor.u32 %v271_v28, %v270_v22  ;;  %v275_v55 = vshll.u32 %v274_v23, 23  ;;  %v643_v54 = vor.u32 8388608, %v642_v47  ;;  %v1786_v34 = vshrl.u32 %v647_v44, 5 }
  0x72   :  { %v177_v24 = vxor.u32 2147483648, %v176_v52  ;;  %v590_v41 = vsel %vm588_vm8, %v589_v14, %v1761_v11  ;;  %v650_v56 = vsub.s32 32, %v649_v16  ;;  %v652_v58 = vshll.u32 %v1506_v13, %v649_v16 }
  0x73   :  { %v276_v49 = vor.u32 4788187, %v275_v55  ;;  %v279_v50 = vcvt.s32.f32 %v272_v8  ;;  %v591_v32 = vadd.s32 %v590_v41, %v586_v48  ;;  %vm1792_vm12 = vcmp.le.f32.partialorder %v531_v7, 0.7853982  ;;  %v60_v41 = vld [vmem:[#allocation6 + $0x120] sm:$0xff] }
  0x74   :  { %v178_v51 = vsel %vm95_vm14, %v177_v24, %v176_v52  ;;  %v655_v57 = vshll.u32 %v1507_v15, %v649_v16  ;;  %v658_v61 = vshll.u32 %v1508_v17, %v649_v16  ;;  %v661_v12 = vshll.u32 %v1509_v19, %v649_v16 }
  0x75   :  { %v181_v63 = vsel %vm1685_vm13, %v1581_v38, %v178_v51  ;;  %v277_v31 = vand.u32 2147483647, %v276_v49  ;;  %vm188_vm13 = vcmp.lt.s32.totalorder %v1772_v40, 2  ;;  %v592_v9 = vadd.s32 536870912, %v591_v32 }
  0x76   :  { %1412 = vcosq.f32 %v181_v63  ;;  %v653_v22 = vshrl.u32 %v1507_v15, %v650_v56  ;;  %v656_v62 = vshrl.u32 %v1508_v17, %v650_v56  ;;  %v664_v26 = vshll.u32 %v1510_v21, %v649_v16 }
  0x77   :  { %1414 = vsinq.f32 %v181_v63  ;;  %v280_v59 = vmul.f32 %v279_v50, %v277_v31  ;;  %vm185_vm14 = vweird.f32 %v1581_v38  ;;  %v659_v52 = vshrl.u32 %v1509_v19, %v650_v56  ;;  %v42_v31 = vld [vmem:[#allocation6 + $0xc0] sm:$0xff] }
  0x78   :  { %v662_v18 = vshrl.u32 %v1510_v21, %v650_v56  ;;  %v665_v20 = vshrl.u32 %v1511_v29, %v650_v56  ;;  %v1807_v28 = vand.u32 3, %v290_v10  ;;  %vm398_vm0 = vcmp.eq.s32.totalorder %v1764_v33, 0 }
  0x79   :  { %v281_v7 = vxor.u32 2147483648, %v280_v59  ;;  %vm401_vm1 = vcmp.eq.s32.totalorder %v1764_v33, 2  ;;  %v593_v15 = vshrl.u32 %v592_v9, 30  ;;  %vm667_vm2 = vcmp.lt.s32.totalorder %v1786_v34, 1  ;;  %v43_v9 = vld [vmem:[#allocation6 + $0xc8] sm:$0xff] }
  0x7a   :  { %v1812_v17 = vshll.u32 %v643_v54, 8  ;;  %v651_v19 = vshrl.u32 %v1506_v13, %v650_v56  ;;  %v663_v11 = vor.u32 %v662_v18, %v661_v12  ;;  %vm670_vm3 = vcmp.lt.s32.totalorder %v1786_v34, 4  ;;  %v63_v18 = vld [vmem:[#allocation6 + $0x130] sm:$0xff] }
  0x7b   :  { %v282_v23 = vsel %vm199_vm15, %v281_v7, %v280_v59  ;;  %v594_v29 = vshll.u32 %v593_v15, 30  ;;  %v617_v24 = vsub.s32 4, %v593_v15  ;;  %v660_v47 = vor.u32 %v659_v52, %v658_v61  ;;  %v45_v7 = vld [vmem:[#allocation6 + $0xd0] sm:$0xff]  ;;  %v61_v52 = vld [vmem:[#allocation6 + $0x128] sm:$0xff] }
  0x7c   :  { %v285_v21 = vsel %vm1724_vm5, %v1584_v39, %v282_v23  ;;  %v654_v8 = vor.u32 %v653_v22, %v652_v58  ;;  %v657_v55 = vor.u32 %v656_v62, %v655_v57  ;;  %v666_v25 = vor.u32 %v665_v20, %v664_v26 }
  0x7d   :  { %1416 = vcosq.f32 %v285_v21  ;;  %vm397_vm15 = vcmp.lt.s32.totalorder %v1764_v33, 2  ;;  %v1822_v51 = vsub.s32 %v591_v32, %v594_v29  ;;  %v618_v13 = vsel %vm2261_vm9, %v617_v24, %v593_v15 }
  0x7e   :  { %1418 = vsinq.f32 %v285_v21  ;;  %v672_v45 = vsel %vm670_vm3, %v660_v47, 2102212464  ;;  %vm668_vm4 = vcmp.lt.s32.totalorder %v1786_v34, 2  ;;  %vm669_vm5 = vcmp.lt.s32.totalorder %v1786_v34, 3 }
  0x7f   :  { %v676_v49 = vsel %vm670_vm3, %v663_v11, 920167782  ;;  %vm293_vm6 = vcmp.eq.s32.totalorder %v1807_v28, 0  ;;  %v597_v14 = vsub.s32 0, %v1822_v51  ;;  %v1836_v10 = vsel %vm1792_vm12, 0, %v618_v13 }
  0x80   :  { %v1413_v44 = vpop.eup %1412  ;;  %v671_v16 = vsel %vm667_vm2, %v651_v19, %v654_v8  ;;  %vm292_vm7 = vcmp.lt.s32.totalorder %v1807_v28, 2  ;;  %v673_v32 = vsel %vm669_vm5, %v657_v55, %v672_v45  ;;  %v675_v56 = vsel %vm667_vm2, %v654_v8, %v657_v55 }
  0x81   :  { %v1415_v48 = vpop.eup %1414  ;;  %v193_v63 = vxor.u32 2147483648, %v1413_v44  ;;  %v680_v58 = vsel %vm670_vm3, %v666_v25, 1326507024  ;;  %vm289_vm8 = vweird.f32 %v1584_v39  ;;  %vm504_vm9 = vcmp.eq.s32.totalorder %v1781_v43, 2 }
  0x82   :  { %v190_v50 = vxor.u32 2147483648, %v1415_v48  ;;  %v1360_v57 = vmin.u32 %v597_v14, %v1822_v51  ;;  %v677_v61 = vsel %vm669_vm5, %v660_v47, %v676_v49  ;;  %v679_v12 = vsel %vm667_vm2, %v657_v55, %v660_v47  ;;  %v64_v14 = vld [vmem:[#allocation6 + $0x138] sm:$0xff] }
  0x83   :  { %v194_v54 = vsel %vm192_vm10, %v193_v63, %v1415_v48  ;;  %vm296_vm10 = vcmp.eq.s32.totalorder %v1807_v28, 2  ;;  %v624_v62 = vadd.s32 3, %v1836_v10  ;;  %v681_v26 = vsel %vm669_vm5, %v663_v11, %v680_v58  ;;  %v67_v28 = vld [vmem:[#allocation6 + $0x148] sm:$0xff] }
  0x84   :  { %v191_v59 = vsel %vm189_vm11, %v1413_v44, %v190_v50  ;;  %vm501_vm11 = vcmp.eq.s32.totalorder %v1781_v43, 0  ;;  %v599_v15 = vclz %v1360_v57  ;;  %v674_v40 = vsel %vm668_vm4, %v671_v16, %v673_v32 }
  0x85   :  { %v195_v22 = vsel %vm188_vm13, %v191_v59, %v194_v54  ;;  %v1869_v23 = vsub.f32 %v60_v41, %v42_v31  ;;  %v400_v19 = vsel %vm398_vm0, %v1413_v44, %v190_v50  ;;  %v403_v21 = vsel %vm401_vm1, %v193_v63, %v1415_v48  ;;  %v46_v50 = vld [vmem:[#allocation6 + $0xd8] sm:$0xff] }
  0x86   :  { %v196_v20 = vsel %vm185_vm14, nan, %v195_v22  ;;  %v678_v11 = vsel %vm668_vm4, %v675_v56, %v677_v61  ;;  %v682_v29 = vsel %vm668_vm4, %v679_v12, %v681_v26  ;;  %v1361_v47 = vadd.s32 4294967294, %v599_v15  ;;  %v49_v22 = vld [vmem:[#allocation6 + $0xe8] sm:$0xff] }
  0x87   :  { %v301_v24 = vmul.f32 %v1576_v36, %v196_v20  ;;  %v1881_v8 = vmul.u32.u64.low %v1812_v17, %v682_v29  ;;  %v1882_v55 = vmul.u32.u64.high %v1812_v17, %v682_v29, %v1881_v8  ;;  %v1417_v25 = vpop.eup %1416  ;;  %v587_v44 = vadd.s32 %v1760_v30, %v1757_v27 }
  0x88   :  { %v1886_v13 = vand.u32 3, %v624_v62  ;;  %v1888_v45 = vsub.f32 %v61_v52, %v43_v9  ;;  %v1890_v48 = vsub.f32 %v63_v18, %v45_v7  ;;  %v1419_v63 = vpop.eup %1418  ;;  %v297_v34 = vxor.u32 2147483648, %v1417_v25  ;;  %v66_v62 = vld [vmem:[#allocation6 + $0x140] sm:$0xff] }
  0x89   :  { %vm1362_vm13 = vcmp.lt.s32.totalorder %v1361_v47, 0  ;;  %v1893_v36 = vmul.u32.u64.low %v1812_v17, %v678_v11  ;;  %v1894_v49 = vmul.u32.u64.high %v1812_v17, %v678_v11, %v1893_v36  ;;  %v294_v16 = vxor.u32 2147483648, %v1419_v63 }
  0x8a   :  { %v1899_v27 = vsel %vm397_vm15, %v400_v19, %v403_v21  ;;  %v602_v30 = vsel %vm1362_vm13, 0, %v1361_v47  ;;  %v690_v31 = vmul.u32 %v1812_v17, %v674_v40  ;;  %v298_v41 = vsel %vm296_vm10, %v297_v34, %v1419_v63 }
  0x8b   :  { %v509_v54 = vmul.f32 %v301_v24, %v1552_v0  ;;  %v603_v32 = vsub.s32 32, %v602_v30  ;;  %v604_v56 = vshll.u32 %v1822_v51, %v602_v30  ;;  %v295_v58 = vsel %vm293_vm6, %v1417_v25, %v294_v16  ;;  %v48_v0 = vld [vmem:[#allocation6 + $0xe0] sm:$0xff] }
  0x8c   :  { %v511_v59 = vmul.f32 %v301_v24, %v1556_v2  ;;  %v513_v33 = vmul.f32 %v301_v24, %v1562_v5  ;;  %v607_v57 = vsub.s32 4294967266, %v602_v30  ;;  %v299_v61 = vsel %vm292_vm7, %v295_v58, %v298_v41 }
  0x8d   :  { %v605_v17 = vshrl.u32 %v587_v44, %v603_v32  ;;  %vm692_vm0 = vc.u32 %v1882_v55, %v1893_v36  ;;  %v1914_v12 = vsub.f32 %v64_v14, %v46_v50  ;;  %v300_v51 = vsel %vm289_vm8, nan, %v299_v61  ;;  %v1196_v44 = vld [vmem:[#allocation6 + $0x198] sm:$0xff] }
  0x8e   :  { %v506_v9 = vsel %vm504_vm9, %v297_v34, %v1419_v63  ;;  %v608_v2 = vadd.s32 127, %v607_v57  ;;  %v693_v5 = vadd.s32 1, %v1894_v49  ;;  %v302_v26 = vmul.f32 %v1578_v37, %v300_v51 }
  0x8f   :  { %v503_v7 = vsel %vm501_vm11, %v1417_v25, %v294_v16  ;;  %v606_v52 = vor.u32 %v605_v17, %v604_v56  ;;  %v1924_v18 = vsub.f32 0.0, %v509_v54  ;;  %v1927_v40 = vsub.f32 0.0, %v511_v59 }
  0x90   :  { %v609_v20 = vshll.u32 %v608_v2, 23  ;;  %v694_v15 = vsel %vm692_vm0, %v693_v5, %v1894_v49  ;;  %v1929_v19 = vsub.f32 0.0, %v513_v33  ;;  %vm500_vm9 = vcmp.lt.s32.totalorder %v1781_v43, 2 }
  0x91   :  { %v510_v21 = vmul.f32 %v302_v26, %v1554_v1  ;;  %v512_v11 = vmul.f32 %v302_v26, %v1558_v3  ;;  %v514_v37 = vmul.f32 %v302_v26, %v1564_v6  ;;  %v613_v29 = vcvt.s32.f32 %v606_v52 }
  0x92   :  { %vm637_vm1 = vcmp.lt.s32.totalorder %v1603_v60, 0  ;;  %v610_v24 = vor.u32 4788187, %v609_v20  ;;  %v695_v47 = vadd.s32 %v694_v15, %v690_v31  ;;  %v1936_v8 = vsub.f32 %v66_v62, %v48_v0 }
  0x93   :  { %v1938_v25 = vsub.f32 %v67_v28, %v49_v22  ;;  %vm1942_vm2 = vcmp.le.f32.partialorder %v635_v35, 0.7853982  ;;  %v1946_v1 = vsub.f32 0.0, %v510_v21  ;;  %v1948_v3 = vsub.f32 0.0, %v512_v11 }
  0x94   :  { %v1950_v6 = vsub.f32 0.0, %v514_v37  ;;  %v1049_v63 = vmul.f32 %v1890_v48, %v1929_v19  ;;  %v611_v34 = vand.u32 2147483647, %v610_v24  ;;  %v696_v49 = vadd.s32 536870912, %v695_v47 }
  0x95   :  { %v1047_v50 = vmul.f32 %v1936_v8, %v1927_v40  ;;  %v1053_v35 = vmul.f32 %v1869_v23, %v1929_v19  ;;  %v1048_v14 = vmul.f32 %v1938_v25, %v1948_v3  ;;  %v1055_v31 = vmul.f32 %v1936_v8, %v1924_v18 }
  0x96   :  { %v1050_v16 = vmul.f32 %v1914_v12, %v1950_v6  ;;  %v1054_v30 = vmul.f32 %v1888_v45, %v1950_v6  ;;  %v614_v41 = vmul.f32 %v613_v29, %v611_v34  ;;  %v697_v54 = vshrl.u32 %v696_v49, 30 }
  0x97   :  { %v1051_v32 = vsub.f32 %v1047_v50, %v1049_v63  ;;  %v1056_v56 = vmul.f32 %v1938_v25, %v1946_v1  ;;  %v1057_v59 = vsub.f32 %v1053_v35, %v1055_v31  ;;  %v1059_v33 = vmul.f32 %v1890_v48, %v1924_v18 }
  0x98   :  { %v1052_v58 = vsub.f32 %v1048_v14, %v1050_v16  ;;  %v1060_v57 = vmul.f32 %v1914_v12, %v1946_v1  ;;  %v615_v61 = vxor.u32 2147483648, %v614_v41  ;;  %v698_v17 = vshll.u32 %v697_v54, 30 }
  0x99   :  { %v721_v0 = vsub.s32 4, %v697_v54  ;;  %v1058_v51 = vsub.f32 %v1054_v30, %v1056_v56  ;;  %v1061_v2 = vmul.f32 %v1869_v23, %v1927_v40  ;;  %v1062_v5 = vmul.f32 %v1888_v45, %v1948_v3 }
  0x9a   :  { %v1067_v22 = vmul.f32 %v1057_v59, %v1929_v19  ;;  %v1978_v62 = vmul.f32 %v1051_v32, %v1929_v19  ;;  %vm2270_vm3 = vcmp.lt.s32.totalorder %v1593_v46, 0  ;;  %v1982_v26 = vsub.s32 %v695_v47, %v698_v17 }
  0x9b   :  { %v616_v28 = vsel %vm2270_vm3, %v615_v61, %v614_v41  ;;  %v722_v52 = vsel %vm637_vm1, %v721_v0, %v697_v54  ;;  %v1068_v20 = vmul.f32 %v1058_v51, %v1950_v6  ;;  %v1991_v21 = vand.u32 3, %v1836_v10 }
  0x9c   :  { %v619_v15 = vsel %vm1792_vm12, %v1593_v46, %v616_v28  ;;  %v1993_v11 = vsub.f32 %v1059_v33, %v1061_v2  ;;  %v1995_v37 = vsub.f32 %v1060_v57, %v1062_v5  ;;  %v507_v29 = vsel %vm500_vm9, %v503_v7, %v506_v9 }
  0x9d   :  { %1420 = vcosq.f32 %v619_v15  ;;  %v701_v24 = vsub.s32 0, %v1982_v26  ;;  %v724_v47 = vsel %vm1942_vm2, 0, %v722_v52  ;;  %v2007_v63 = vmul.f32 %v1052_v58, %v1950_v6 }
  0x9e   :  { %1422 = vsinq.f32 %v619_v15  ;;  %v1065_v4 = vmul.f32 %v1993_v11, %v1927_v40  ;;  %v1066_v10 = vmul.f32 %v1995_v37, %v1948_v3  ;;  %v2012_v43 = vsel %vm185_vm14, nan, %v1899_v27 }
  0x9f   :  { %vm630_vm12 = vcmp.eq.s32.totalorder %v1886_v13, 2  ;;  %v691_v9 = vadd.s32 %v1893_v36, %v1882_v55  ;;  %v1364_v7 = vmin.u32 %v701_v24, %v1982_v26  ;;  %v2020_v34 = vsel %vm289_vm8, nan, %v507_v29 }
  0xa0   :  { %vm627_vm15 = vcmp.eq.s32.totalorder %v1886_v13, 0  ;;  %vm836_vm4 = vcmp.eq.s32.totalorder %v1991_v21, 0  ;;  %v1069_v49 = vsub.f32 %v1065_v4, %v1067_v22  ;;  %v1070_v50 = vsub.f32 %v1066_v10, %v1068_v20 }
  0xa1   :  { %v1073_v38 = vmul.f32 %v1993_v11, %v1924_v18  ;;  %vm626_vm14 = vcmp.lt.s32.totalorder %v1886_v13, 2  ;;  %v703_v27 = vclz %v1364_v7  ;;  %v2027_v35 = vadd.s32 3, %v724_v47 }
  0xa2   :  { %vm835_vm5 = vcmp.lt.s32.totalorder %v1991_v21, 2  ;;  %vm839_vm6 = vcmp.eq.s32.totalorder %v1991_v21, 2  ;;  %v2031_v39 = vand.u32 3, %v724_v47  ;;  %vm623_vm7 = vweird.f32 %v1593_v46 }
  0xa3   :  { %v1074_v55 = vmul.f32 %v1995_v37, %v1946_v1  ;;  %v1075_v36 = vsub.f32 %v1978_v62, %v1073_v38  ;;  %v2038_v14 = vmul.f32 %v1057_v59, %v1924_v18  ;;  %v2041_v16 = vmul.f32 %v1058_v51, %v1946_v1 }
  0xa4   :  { %v1365_v30 = vadd.s32 4294967294, %v703_v27  ;;  %v1079_v31 = vmul.f32 %v1051_v32, %v1927_v40  ;;  %v1080_v41 = vmul.f32 %v1052_v58, %v1948_v3  ;;  %v1083_v54 = vmul.f32 2.0, %v2012_v43 }
  0xa5   :  { %v1076_v56 = vsub.f32 %v2007_v63, %v1074_v55  ;;  %v1084_v33 = vmul.f32 2.0, %v2020_v34  ;;  %v1089_v57 = vmul.f32 2.0, %v1069_v49  ;;  %v1090_v61 = vmul.f32 2.0, %v1070_v50 }
  0xa6   :  { %vm1366_vm8 = vcmp.lt.s32.totalorder %v1365_v30, 0  ;;  %v1081_v17 = vsub.f32 %v2038_v14, %v1079_v31  ;;  %v1082_v0 = vsub.f32 %v2041_v16, %v1080_v41  ;;  %v1085_v2 = vmul.f32 %v1083_v54, %v1051_v32 }
  0xa7   :  { %v706_v5 = vsel %vm1366_vm8, 0, %v1365_v30  ;;  %v1086_v22 = vmul.f32 %v1084_v33, %v1052_v58  ;;  %v1093_v62 = vmul.f32 %v1083_v54, %v1057_v59  ;;  %v1094_v28 = vmul.f32 %v1084_v33, %v1058_v51  ;;  %v1421_v52 = vpop.eup %1420 }
  0xa8   :  { %v707_v20 = vsub.s32 32, %v706_v5  ;;  %v708_v15 = vshll.u32 %v1982_v26, %v706_v5  ;;  %v711_v29 = vsub.s32 4294967266, %v706_v5  ;;  %v1087_v24 = vadd.f32 %v1085_v2, %v1869_v23  ;;  %v1423_v47 = vpop.eup %1422 }
  0xa9   :  { %v631_v4 = vxor.u32 2147483648, %v1421_v52  ;;  %v1088_v10 = vadd.f32 %v1086_v22, %v1888_v45  ;;  %v1095_v63 = vadd.f32 %v1093_v62, %v1890_v48  ;;  %v1096_v7 = vadd.f32 %v1094_v28, %v1914_v12  ;;  %v1436_v22 = vld [vmem:[#allocation6 + $0x150] sm:$0xff]  ;;  %v1437_v28 = vld [vmem:[#allocation6 + $0x160] sm:$0xff] }
  0xaa   :  { %v628_v32 = vxor.u32 2147483648, %v1423_v47  ;;  %v709_v49 = vshrl.u32 %v691_v9, %v707_v20  ;;  %v712_v58 = vadd.s32 127, %v711_v29  ;;  %v2055_v59 = vadd.f32 %v1089_v57, %v1087_v24 }
  0xab   :  { %v632_v51 = vsel %vm630_vm12, %v631_v4, %v1423_v47  ;;  %v841_v26 = vsel %vm839_vm6, %v631_v4, %v1423_v47  ;;  %v2061_v23 = vadd.f32 %v1090_v61, %v1088_v10  ;;  %v1097_v50 = vmul.f32 2.0, %v1075_v36 }
  0xac   :  { %v629_v45 = vsel %vm627_vm15, %v1421_v52, %v628_v32  ;;  %v710_v48 = vor.u32 %v709_v49, %v708_v15  ;;  %v713_v38 = vshll.u32 %v712_v58, 23  ;;  %v838_v12 = vsel %vm836_vm4, %v1421_v52, %v628_v32  ;;  %v1438_v52 = vld [vmem:[#allocation6 + $0x170] sm:$0xff] }
  0xad   :  { %v633_v9 = vsel %vm626_vm14, %v629_v45, %v632_v51  ;;  %v842_v27 = vsel %vm835_vm5, %v838_v12, %v841_v26  ;;  %v1098_v55 = vmul.f32 2.0, %v1076_v56  ;;  %v2071_v14 = vadd.f32 %v1097_v50, %v1095_v63 }
  0xae   :  { %v634_v36 = vsel %vm623_vm7, nan, %v633_v9  ;;  %v714_v16 = vor.u32 4788187, %v713_v38  ;;  %v717_v30 = vcvt.s32.f32 %v710_v48  ;;  %v843_v31 = vsel %vm623_vm7, nan, %v842_v27  ;;  %v1188_v38 = vld [vmem:[#allocation6 + $0x180] sm:$0xff]  ;;  %v1189_v9 = vld [vmem:[#allocation6 + $0x188] sm:$0xff] }
  0xaf   :  { %v739_v41 = vmul.f32 %v1588_v42, %v634_v36  ;;  %v959_v57 = vmul.f32 %v843_v31, %v2012_v43  ;;  %v991_v13 = vmul.f32 %v1924_v18, %v843_v31  ;;  %v999_v21 = vmul.f32 %v1927_v40, %v843_v31  ;;  %v1195_v27 = vld [vmem:[#allocation6 + $0x190] sm:$0xff] }
  0xb0   :  { %v715_v61 = vand.u32 2147483647, %v714_v16  ;;  %v1007_v56 = vmul.f32 %v1929_v19, %v843_v31  ;;  %v2082_v2 = vadd.f32 %v1098_v55, %v1096_v7  ;;  %v1101_v5 = vmul.f32 %v1083_v54, %v1993_v11 }
  0xb1   :  { %v947_v62 = vmul.f32 %v1436_v22, %v739_v41  ;;  %v949_v46 = vmul.f32 %v1437_v28, %v739_v41  ;;  %v951_v20 = vmul.f32 %v1438_v52, %v739_v41  ;;  %v1102_v42 = vmul.f32 %v1084_v33, %v1995_v37 }
  0xb2   :  { %v718_v15 = vmul.f32 %v717_v30, %v715_v61  ;;  %v1103_v29 = vadd.f32 %v1101_v5, %v1936_v8  ;;  %v1105_v24 = vmul.f32 2.0, %v1081_v17  ;;  %v1106_v47 = vmul.f32 2.0, %v1082_v0  ;;  %v1205_v5 = vld [vmem:[#allocation6 + $0x1a8] sm:$0xff] }
  0xb3   :  { %v961_v4 = vmul.f32 %v1924_v18, %v947_v62  ;;  %v963_v10 = vmul.f32 %v1927_v40, %v949_v46  ;;  %v967_v63 = vmul.f32 %v1929_v19, %v951_v20  ;;  %v973_v11 = vmul.f32 %v1927_v40, %v951_v20 }
  0xb4   :  { %v719_v54 = vxor.u32 2147483648, %v718_v15  ;;  %v975_v7 = vmul.f32 %v1929_v19, %v949_v46  ;;  %v979_v32 = vmul.f32 %v1929_v19, %v947_v62  ;;  %v981_v37 = vmul.f32 %v1924_v18, %v951_v20 }
  0xb5   :  { %v965_v33 = vadd.f32 %v963_v10, %v961_v4  ;;  %v985_v8 = vmul.f32 %v1924_v18, %v949_v46  ;;  %v987_v17 = vmul.f32 %v1927_v40, %v947_v62  ;;  %v993_v0 = vmul.f32 %v947_v62, %v2012_v43 }
  0xb6   :  { %v720_v49 = vsel %vm637_vm1, %v719_v54, %v718_v15  ;;  %v977_v58 = vsub.f32 %v973_v11, %v975_v7  ;;  %v983_v51 = vsub.f32 %v979_v32, %v981_v37  ;;  %v1001_v26 = vmul.f32 %v949_v46, %v2012_v43 }
  0xb7   :  { %v723_v19 = vsel %vm1942_vm2, %v1603_v60, %v720_v49  ;;  %v969_v50 = vadd.f32 %v967_v63, %v965_v33  ;;  %v989_v45 = vsub.f32 %v985_v8, %v987_v17  ;;  %v995_v48 = vadd.f32 %v993_v0, %v991_v13 }
  0xb8   :  { %1424 = vcosq.f32 %v723_v19  ;;  %v1003_v18 = vadd.f32 %v1001_v26, %v999_v21  ;;  %v1009_v40 = vmul.f32 %v951_v20, %v2012_v43  ;;  %v1104_v12 = vadd.f32 %v1102_v42, %v1938_v25  ;;  %v1204_v21 = vld [vmem:[#allocation6 + $0x1a0] sm:$0xff] }
  0xb9   :  { %1426 = vsinq.f32 %v723_v19  ;;  %v2105_v55 = vsub.f32 %v959_v57, %v969_v50  ;;  %v2107_v36 = vadd.f32 %v995_v48, %v977_v58  ;;  %v1107_v16 = vadd.f32 %v1105_v24, %v1103_v29  ;;  %v1439_v50 = vld [vmem:[#allocation6 + $0x158] sm:$0xff]  ;;  %v1440_v48 = vld [vmem:[#allocation6 + $0x168] sm:$0xff] }
  0xba   :  { %v2109_v30 = vadd.f32 %v1003_v18, %v983_v51  ;;  %v1011_v31 = vadd.f32 %v1009_v40, %v1007_v56  ;;  %v1108_v41 = vadd.f32 %v1106_v47, %v1104_v12  ;;  %v1190_v13 = vsub.f32 %v2055_v59, %v1188_v38  ;;  %v1441_v18 = vld [vmem:[#allocation6 + $0x178] sm:$0xff] }
  0xbb   :  { %v1015_v43 = vmul.f32 %v2105_v55, %v2105_v55  ;;  %v1017_v25 = vmul.f32 %v2107_v36, %v2107_v36  ;;  %v1191_v57 = vsub.f32 %v2061_v23, %v1189_v9  ;;  %v1197_v61 = vsub.f32 %v2071_v14, %v1195_v27 }
  0xbc   :  { %v2118_v22 = vadd.f32 %v1011_v31, %v989_v45  ;;  %v1021_v56 = vmul.f32 %v2109_v30, %v2109_v30  ;;  %v1192_v62 = vand.u32 2147483647, %v1190_v13  ;;  %v1198_v59 = vsub.f32 %v2082_v2, %v1196_v44 }
  0xbd   :  { %v1019_v28 = vadd.f32 %v1017_v25, %v1015_v43  ;;  %v1193_v46 = vand.u32 2147483647, %v1191_v57  ;;  %v1199_v52 = vand.u32 2147483647, %v1197_v61  ;;  %v1206_v20 = vsub.f32 %v1107_v16, %v1204_v21 }
  0xbe   :  { %v729_v42 = vand.u32 3, %v2027_v35  ;;  %v1025_v23 = vmul.f32 %v2118_v22, %v2118_v22  ;;  %v1200_v15 = vand.u32 2147483647, %v1198_v59  ;;  %v1207_v14 = vsub.f32 %v1108_v41, %v1205_v5 }
  0xbf   :  { %v1023_v29 = vadd.f32 %v1021_v56, %v1019_v28  ;;  %v1201_v24 = vadd.f32 %v1199_v52, %v1192_v62  ;;  %v1208_v47 = vand.u32 2147483647, %v1206_v20  ;;  %vm942_vm11 = vcmp.eq.s32.totalorder %v2031_v39, 2 }
  0xc0   :  { %v1202_v4 = vadd.f32 %v1200_v15, %v1193_v46  ;;  %v1209_v10 = vand.u32 2147483647, %v1207_v14  ;;  %vm734_vm10 = vcmp.eq.s32.totalorder %v729_v42, 2  ;;  %vm731_vm13 = vcmp.eq.s32.totalorder %v729_v42, 0 }
  0xc1   :  { %v1027_v63 = vadd.f32 %v1025_v23, %v1023_v29  ;;  %v2126_v11 = vadd.f32 %v1208_v47, %v1201_v24  ;;  %vm939_vm0 = vcmp.eq.s32.totalorder %v2031_v39, 0  ;;  %vm730_vm9 = vcmp.lt.s32.totalorder %v729_v42, 2 }
  0xc2   :  { %v1425_v2 = vpop.eup %1424  ;;  %v2129_v54 = vadd.f32 %v1209_v10, %v1202_v4  ;;  %vm938_vm1 = vcmp.lt.s32.totalorder %v2031_v39, 2  ;;  %vm727_vm2 = vweird.f32 %v1603_v60 }
  0xc3   :  { %v1427_v35 = vpop.eup %1426  ;;  %v735_v7 = vxor.u32 2147483648, %v1425_v2  ;;  %v1029_v32 = vadd.f32 1e-12, %v1027_v63 }
  0xc4   :  { %v732_v37 = vxor.u32 2147483648, %v1427_v35 }
  0xc5   :  { %v736_v33 = vsel %vm734_vm10, %v735_v7, %v1427_v35  ;;  %v944_v8 = vsel %vm942_vm11, %v735_v7, %v1427_v35  ;;  %1428 = vrsqrt.f32 %v1029_v32 }
  0xc6   :  { %v733_v17 = vsel %vm731_vm13, %v1425_v2, %v732_v37  ;;  %v941_v0 = vsel %vm939_vm0, %v1425_v2, %v732_v37 }
  0xc7   :  { %v737_v49 = vsel %vm730_vm9, %v733_v17, %v736_v33  ;;  %v945_v58 = vsel %vm938_vm1, %v941_v0, %v944_v8 }
  0xc8   :  { %v738_v51 = vsel %vm727_vm2, nan, %v737_v49  ;;  %v946_v19 = vsel %vm727_vm2, nan, %v945_v58 }
  0xc9   :  { %v740_v26 = vmul.f32 %v1600_v53, %v738_v51  ;;  %v960_v39 = vmul.f32 %v946_v19, %v2020_v34  ;;  %v992_v60 = vmul.f32 %v1946_v1, %v946_v19  ;;  %v1000_v12 = vmul.f32 %v1948_v3, %v946_v19 }
  0xca   :  { %v1008_v9 = vmul.f32 %v1950_v6, %v946_v19 }
  0xcb   :  { %v948_v45 = vmul.f32 %v1439_v50, %v740_v26  ;;  %v950_v38 = vmul.f32 %v1440_v48, %v740_v26  ;;  %v952_v40 = vmul.f32 %v1441_v18, %v740_v26 }
  0xcd   :  { %v962_v27 = vmul.f32 %v1946_v1, %v948_v45  ;;  %v964_v16 = vmul.f32 %v1948_v3, %v950_v38  ;;  %v968_v53 = vmul.f32 %v1950_v6, %v952_v40  ;;  %v974_v44 = vmul.f32 %v1948_v3, %v952_v40 }
  0xce   :  { %v976_v31 = vmul.f32 %v1950_v6, %v950_v38  ;;  %v980_v41 = vmul.f32 %v1950_v6, %v948_v45  ;;  %v982_v13 = vmul.f32 %v1946_v1, %v952_v40  ;;  %v986_v21 = vmul.f32 %v1946_v1, %v950_v38 }
  0xcf   :  { %v1429_v43 = vpop.eup %1428  ;;  %v966_v25 = vadd.f32 %v964_v16, %v962_v27  ;;  %v988_v57 = vmul.f32 %v1948_v3, %v948_v45  ;;  %v994_v61 = vmul.f32 %v948_v45, %v2020_v34  ;;  %v1002_v5 = vmul.f32 %v950_v38, %v2020_v34 }
  0xd0   :  { %v978_v56 = vsub.f32 %v974_v44, %v976_v31  ;;  %v984_v62 = vsub.f32 %v980_v41, %v982_v13  ;;  %v1010_v59 = vmul.f32 %v952_v40, %v2020_v34  ;;  %v2152_v42 = vmul.f32 %v1429_v43, %v2107_v36 }
  0xd1   :  { %v970_v28 = vadd.f32 %v968_v53, %v966_v25  ;;  %v990_v46 = vsub.f32 %v986_v21, %v988_v57  ;;  %v996_v52 = vadd.f32 %v994_v61, %v992_v60  ;;  %v1004_v6 = vadd.f32 %v1002_v5, %v1000_v12 }
  0xd2   :  { %v1012_v20 = vadd.f32 %v1010_v59, %v1008_v9  ;;  %v2155_v1 = vmul.f32 %v1429_v43, %v2109_v30  ;;  %v2158_v3 = vmul.f32 %v1429_v43, %v2118_v22  ;;  %v1109_v34 = vmul.f32 %v2152_v42, %v2152_v42 }
  0xd3   :  { %v972_v23 = vsub.f32 %v960_v39, %v970_v28  ;;  %v998_v15 = vadd.f32 %v996_v52, %v978_v56  ;;  %v1006_v14 = vadd.f32 %v1004_v6, %v984_v62  ;;  %v1033_v33 = vmul.f32 %v1429_v43, %v2105_v55  ;;  %v1248_v52 = vld [vmem:[#allocation6 + $0x60] sm:$0xff] }
  0xd4   :  { %v1014_v29 = vadd.f32 %v1012_v20, %v990_v46  ;;  %v1111_v24 = vmul.f32 %v2155_v1, %v2155_v1  ;;  %v1115_v36 = vmul.f32 %v2158_v3, %v2158_v3  ;;  %v1245_v46 = vld [vmem:[#allocation6] sm:$0xff]  ;;  %v1255_v20 = vld [vmem:[#allocation6 + $0x10] sm:$0xff] }
  0xd5   :  { %v1016_v47 = vmul.f32 %v972_v23, %v972_v23  ;;  %v1018_v4 = vmul.f32 %v998_v15, %v998_v15  ;;  %v1022_v30 = vmul.f32 %v1006_v14, %v1006_v14  ;;  %v1375_v8 = vclamps-f32 %v1033_v33, 1.0 }
  0xd6   :  { %v1113_v10 = vadd.f32 %v1111_v24, %v1109_v34  ;;  %v1026_v22 = vmul.f32 %v1014_v29, %v1014_v29  ;;  %v1279_v34 = vld [vmem:[#allocation6 + $0x30] sm:$0xff] }
  0xd7   :  { %v1020_v63 = vadd.f32 %v1018_v4, %v1016_v47  ;;  %v1129_v17 = vand.u32 2147483647, %v1375_v8  ;;  %vm1171_vm15 = vcmp.ge.f32.partialorder %v1375_v8, 0.0  ;;  %v1282_v24 = vld [vmem:[#allocation6 + $0x90] sm:$0xff] }
  0xd8   :  { %v1117_v2 = vadd.f32 %v1115_v36, %v1113_v10  ;;  %v1289_v10 = vld [vmem:[#allocation6 + $0x40] sm:$0xff] }
  0xd9   :  { %v1024_v35 = vadd.f32 %v1022_v30, %v1020_v63  ;;  %v1292_v63 = vld [vmem:[#allocation6 + $0xa0] sm:$0xff] }
  0xda   :  { %v1119_v7 = vmax.f32 %v1117_v2, 1e-16 }
  0xdb   :  { %v1028_v32 = vadd.f32 %v1026_v22, %v1024_v35  ;;  %v1267_v35 = vld [vmem:[#allocation6 + $0x20] sm:$0xff] }
  0xdc   :  { %1430 = vrsqrt.f32 %v1119_v7  ;;  %v1270_v7 = vld [vmem:[#allocation6 + $0x80] sm:$0xff] }
  0xdd   :  { %v1030_v37 = vadd.f32 1e-12, %v1028_v32  ;;  %v1284_v32 = vsub.f32 %v1279_v34, %v1282_v24  ;;  %v1240_v34 = vstv %s2211_s5  ;;  %v1312_v24 = vstv %s2205_s1 }
  0xdf   :  { %1432 = vrsqrt.f32 %v1030_v37 }
  0xe6   :  { %v2167_v0 = vpop.eup %1430 }
  0xe7   :  { %v1123_v49 = vmul.f32 %v2167_v0, %v1117_v2 }
  0xe9   :  { %v1433_v58 = vpop.eup %1432  ;;  %vm2170_vm3 = vcmp.le.f32.partialorder %v1129_v17, %v1123_v49  ;;  %v1301_v17 = vld [vmem:[#allocation6 + $0x50] sm:$0xff] }
  0xea   :  { %v2174_v26 = vmul.f32 %v1433_v58, %v998_v15  ;;  %v2176_v19 = vmul.f32 %v1433_v58, %v1006_v14  ;;  %v2178_v50 = vmul.f32 %v1433_v58, %v1014_v29  ;;  %v1133_v55 = vsel %vm2170_vm3, %v1375_v8, %v1123_v49  ;;  %v1258_v15 = vld [vmem:[#allocation6 + $0x70] sm:$0xff] }
  0xeb   :  { %v1135_v18 = vmul.f32 %v1133_v55, %v1133_v55  ;;  %v1034_v13 = vmul.f32 %v1433_v58, %v972_v23  ;;  %v1250_v29 = vsub.f32 %v1245_v46, %v1248_v52  ;;  %v1260_v30 = vsub.f32 %v1255_v20, %v1258_v15  ;;  %v1304_v49 = vld [vmem:[#allocation6 + $0xb0] sm:$0xff] }
  0xec   :  { %v1110_v45 = vmul.f32 %v2174_v26, %v2174_v26  ;;  %v1112_v48 = vmul.f32 %v2176_v19, %v2176_v19  ;;  %v1116_v38 = vmul.f32 %v2178_v50, %v2178_v50  ;;  %v1294_v8 = vsub.f32 %v1289_v10, %v1292_v63 }
  0xed   :  { %v1137_v39 = vmul.f32 %v1135_v18, %v1135_v18  ;;  %v1147_v60 = vmul.f32 0.017352764, %v1135_v18  ;;  %v1143_v9 = vmul.f32 0.030381944, %v1135_v18  ;;  %v1139_v44 = vmul.f32 0.075, %v1135_v18 }
  0xee   :  { %v1114_v40 = vadd.f32 %v1112_v48, %v1110_v45  ;;  %v2188_v57 = vclamps-f32 %v1034_v13, 1.0  ;;  %v1163_v5 = vmul.f32 %v1135_v18, %v1133_v55  ;;  %v1252_v45 = vand.u32 2147483647, %v1250_v29 }
  0xef   :  { %v1149_v27 = vadd.f32 0.022372158, %v1147_v60  ;;  %v1151_v53 = vmul.f32 0.013964844, %v1137_v39  ;;  %v1145_v31 = vadd.f32 0.04464286, %v1143_v9  ;;  %v1317_v63 = vstv %s2217_s6 }
  0xf0   :  { %v1118_v12 = vadd.f32 %v1116_v38, %v1114_v40  ;;  %v1141_v43 = vadd.f32 0.16666667, %v1139_v44  ;;  %v1130_v62 = vand.u32 2147483647, %v2188_v57  ;;  %v1262_v48 = vand.u32 2147483647, %v1260_v30 }
  0xf1   :  { %v1153_v41 = vadd.f32 %v1151_v53, %v1149_v27  ;;  %v1213_v40 = vld [vmem:[#allocation6 + $0x1b0] sm:$0xff]  ;;  %v1286_v27 = vand.u32 2147483647, %v1284_v32  ;;  %vm1172_vm4 = vcmp.ge.f32.partialorder %v2188_v57, 0.0 }
  0xf2   :  { %v1120_v16 = vmax.f32 %v1118_v12, 1e-16  ;;  %v1229_v9 = vld [vmem:[#allocation6 + $0x1d0] sm:$0xff] }
  0xf3   :  { %v1155_v21 = vmul.f32 %v1153_v41, %v1137_v39 }
  0xf4   :  { %1434 = vrsqrt.f32 %v1120_v16  ;;  %v1306_v16 = vsub.f32 %v1301_v17, %v1304_v49 }
  0xf5   :  { %v1157_v25 = vadd.f32 %v1155_v21, %v1145_v31  ;;  %v1296_v31 = vand.u32 2147483647, %v1294_v8  ;;  %v1264_v21 = vadd.f32 %v1262_v48, %v1252_v45  ;;  %v1256_v8 = vld [vmem:[#allocation6 + $0x18] sm:$0xff]  ;;  %v1290_v48 = vld [vmem:[#allocation6 + $0x48] sm:$0xff] }
  0xf7   :  { %v1159_v61 = vmul.f32 %v1157_v25, %v1137_v39  ;;  %v1272_v39 = vsub.f32 %v1267_v35, %v1270_v7  ;;  %v1246_v35 = vld [vmem:[#allocation6 + $0x8] sm:$0xff] }
  0xf9   :  { %v1161_v56 = vadd.f32 %v1159_v61, %v1141_v43 }
  0xfb   :  { %v1165_v28 = vmul.f32 %v1163_v5, %v1161_v56  ;;  %v1274_v5 = vand.u32 2147483647, %v1272_v39 }
  0xfd   :  { %v1167_v23 = vadd.f32 %v1165_v28, %v1133_v55  ;;  %v1298_v28 = vadd.f32 %v1296_v31, %v1286_v27  ;;  %v1276_v15 = vadd.f32 %v1274_v5, %v1264_v21  ;;  %v1221_v21 = vld [vmem:[#allocation6 + $0x1c8] sm:$0xff] }
  0xfe   :  { %v2191_v59 = vpop.eup %1434 }
  0xff   :  { %v1124_v6 = vmul.f32 %v2191_v59, %v1118_v12  ;;  %v1169_v47 = vsub.f32 1.5707964, %v1167_v23  ;;  %v1173_v4 = vsub.f32 3.1415927, %v1167_v23  ;;  %v1220_v12 = vld [vmem:[#allocation6 + $0x1c0] sm:$0xff]  ;;  %v1313_v7 = vmul.f32 %v1312_v24, %v1276_v15 }
 0x101   :  { %vm2194_vm12 = vcmp.le.f32.partialorder %v1130_v62, %v1124_v6  ;;  %v1175_v2 = vsel %vm1171_vm15, %v1167_v23, %v1173_v4 }
 0x102   :  { %v2201_v36 = vsel %vm2194_vm12, %v2188_v57, %v1124_v6  ;;  %v1177_v55 = vsel %vm2170_vm3, %v1169_v47, %v1175_v2  ;;  %v1237_v6 = vstv %s2207_s4 }
 0x103   :  { %v1136_v22 = vmul.f32 %v2201_v36, %v2201_v36  ;;  %v1179_v18 = vmul.f32 %v2167_v0, %v1177_v55  ;;  %v1238_v4 = vmul.f32 %v1237_v6, %v2126_v11  ;;  %v1283_v55 = vld [vmem:[#allocation6 + $0x98] sm:$0xff] }
 0x105   :  { %v1138_v37 = vmul.f32 %v1136_v22, %v1136_v22  ;;  %v1148_v33 = vmul.f32 0.017352764, %v1136_v22  ;;  %v1144_v58 = vmul.f32 0.030381944, %v1136_v22  ;;  %v1181_v53 = vmul.f32 %v1179_v18, %v2152_v42 }
 0x106   :  { %v1183_v44 = vmul.f32 %v1179_v18, %v2155_v1  ;;  %v1185_v51 = vmul.f32 %v1179_v18, %v2158_v3  ;;  %v1140_v41 = vmul.f32 0.075, %v1136_v22  ;;  %v1308_v42 = vand.u32 2147483647, %v1306_v16 }
 0x107   :  { %v1150_v38 = vadd.f32 0.022372158, %v1148_v33  ;;  %v1152_v60 = vmul.f32 0.013964844, %v1138_v37  ;;  %v1146_v13 = vadd.f32 0.04464286, %v1144_v58  ;;  %v1215_v43 = vsub.f32 %v1181_v53, %v1213_v40 }
 0x108   :  { %v1222_v25 = vsub.f32 %v1183_v44, %v1220_v12  ;;  %v1231_v61 = vsub.f32 %v1185_v51, %v1229_v9  ;;  %v1142_v46 = vadd.f32 0.16666667, %v1140_v41  ;;  %v1164_v29 = vmul.f32 %v1136_v22, %v2201_v36  ;;  %v1249_v33 = vld [vmem:[#allocation6 + $0x68] sm:$0xff]  ;;  %v1280_v58 = vld [vmem:[#allocation6 + $0x38] sm:$0xff] }
 0x109   :  { %v1154_v0 = vadd.f32 %v1152_v60, %v1150_v38  ;;  %v1217_v1 = vand.u32 2147483647, %v1215_v43  ;;  %v1310_v30 = vadd.f32 %v1308_v42, %v1298_v28  ;;  %v1251_v11 = vsub.f32 %v1246_v35, %v1249_v33  ;;  %v1293_v38 = vld [vmem:[#allocation6 + $0xa8] sm:$0xff]  ;;  %v1302_v44 = vld [vmem:[#allocation6 + $0x58] sm:$0xff] }
 0x10a   :  { %v1224_v62 = vand.u32 2147483647, %v1222_v25  ;;  %v1233_v3 = vand.u32 2147483647, %v1231_v61  ;;  %v1268_v60 = vld [vmem:[#allocation6 + $0x28] sm:$0xff]  ;;  %v1285_v9 = vsub.f32 %v1280_v58, %v1283_v55  ;;  %v1295_v53 = vsub.f32 %v1290_v48, %v1293_v38  ;;  %v1305_v51 = vld [vmem:[#allocation6 + $0xb8] sm:$0xff] }
 0x10b   :  { %v1156_v56 = vmul.f32 %v1154_v0, %v1138_v37  ;;  %v1318_v22 = vmul.f32 %v1317_v63, %v1310_v30  ;;  %v1271_v12 = vld [vmem:[#allocation6 + $0x88] sm:$0xff]  ;;  %v1253_v31 = vand.u32 2147483647, %v1251_v11  ;;  %v1214_v0 = vld [vmem:[#allocation6 + $0x1b8] sm:$0xff]  ;;  %v1307_v61 = vsub.f32 %v1302_v44, %v1305_v51 }
 0x10c   :  { %v1226_v20 = vadd.f32 %v1224_v62, %v1217_v1  ;;  %v1230_v43 = vld [vmem:[#allocation6 + $0x1d8] sm:$0xff]  ;;  %v1287_v25 = vand.u32 2147483647, %v1285_v9  ;;  %v1297_v14 = vand.u32 2147483647, %v1295_v53 }
 0x10d   :  { %v1158_v52 = vadd.f32 %v1156_v56, %v1146_v13  ;;  %v1273_v13 = vsub.f32 %v1268_v60, %v1271_v12 }
 0x10e   :  { %v1235_v47 = vadd.f32 %v1233_v3, %v1226_v20 }
 0x10f   :  { %v1160_v23 = vmul.f32 %v1158_v52, %v1138_v37  ;;  %v1259_v37 = vld [vmem:[#allocation6 + $0x78] sm:$0xff]  ;;  %v1275_v28 = vand.u32 2147483647, %v1273_v13 }
 0x110   :  { %v1241_v2 = vmul.f32 %v1240_v34, %v1235_v47  ;;  %v1261_v45 = vsub.f32 %v1256_v8, %v1259_v37 }
 0x111   :  { %v1162_v10 = vadd.f32 %v1160_v23, %v1142_v46  ;;  %v1309_v46 = vand.u32 2147483647, %v1307_v61  ;;  %v1299_v23 = vadd.f32 %v1297_v14, %v1287_v25 }
 0x112   :  { %v1243_v17 = vadd.f32 %v1241_v2, %v1238_v4  ;;  %v1263_v57 = vand.u32 2147483647, %v1261_v45 }
 0x113   :  { %v1166_v32 = vmul.f32 %v1164_v29, %v1162_v10 }
 0x114   :  { %v1315_v18 = vadd.f32 %v1313_v7, %v1243_v17  ;;  %v1265_v1 = vadd.f32 %v1263_v57, %v1253_v31 }
 0x115   :  { %v1168_v49 = vadd.f32 %v1166_v32, %v2201_v36 }
 0x116   :  { %v1320_v27 = vadd.f32 %v1318_v22, %v1315_v18 }
 0x117   :  { %v1170_v40 = vsub.f32 1.5707964, %v1168_v49  ;;  %v1174_v39 = vsub.f32 3.1415927, %v1168_v49 }
 0x118   :  { %1322 = vst [vmem:[#allocation7] sm:$0xff] %v1320_v27 }
 0x119   :  { %v1176_v16 = vsel %vm1172_vm4, %v1168_v49, %v1174_v39 }
 0x11a   :  { %v1178_v36 = vsel %vm2194_vm12, %v1170_v40, %v1176_v16 }
 0x11b   :  { %v1180_v41 = vmul.f32 %v2191_v59, %v1178_v36 }
 0x11d   :  { %v1182_v5 = vmul.f32 %v1180_v41, %v2174_v26  ;;  %v1184_v56 = vmul.f32 %v1180_v41, %v2176_v19  ;;  %v1186_v42 = vmul.f32 %v1180_v41, %v2178_v50  ;;  %v1277_v26 = vadd.f32 %v1275_v28, %v1265_v1 }
 0x11e   :  { %v1239_v19 = vmul.f32 %v1237_v6, %v2129_v54  ;;  %v1311_v50 = vadd.f32 %v1309_v46, %v1299_v23 }
 0x11f   :  { %v1216_v62 = vsub.f32 %v1182_v5, %v1214_v0  ;;  %v1223_v3 = vsub.f32 %v1184_v56, %v1221_v21  ;;  %v1232_v59 = vsub.f32 %v1186_v42, %v1230_v43  ;;  %v1314_v30 = vmul.f32 %v1312_v24, %v1277_v26 }
 0x120   :  { %v1319_v2 = vmul.f32 %v1317_v63, %v1311_v50 }
 0x121   :  { %v1218_v52 = vand.u32 2147483647, %v1216_v62  ;;  %v1225_v20 = vand.u32 2147483647, %v1223_v3  ;;  %v1234_v15 = vand.u32 2147483647, %v1232_v59 }
 0x123   :  { %v1227_v29 = vadd.f32 %v1225_v20, %v1218_v52 }
 0x125   :  { %v1236_v47 = vadd.f32 %v1234_v15, %v1227_v29 }
 0x127   :  { %v1242_v4 = vmul.f32 %v1240_v34, %v1236_v47 }
 0x129   :  { %v1244_v10 = vadd.f32 %v1242_v4, %v1239_v19 }
 0x12b   :  { %v1316_v35 = vadd.f32 %v1314_v30, %v1244_v10 }
 0x12d   :  { %v1321_v7 = vadd.f32 %v1319_v2, %v1316_v35 }
 0x12f   :  { %1323 = vst [vmem:[#allocation7 + $0x8] sm:$0xff] %v1321_v7 }
 0x130   :  { %1485 = shalt.err (!%p1482_p1)
}
 0x131   :  { %s1486_s12 = scalar_lea.hbm %s2260_s2, 256 }
 0x132   :  { %p1487_p2 = scmp.ne.s32.totalorder %s2260_s2, %s1486_s12  ;;  %p1490_p3 = scmp.lt.u32.totalorder %s1486_s12, %s2260_s2 }
 0x134   :  { %p1492_p4 = pnand %p1490_p3, %p1487_p2 }
 0x136   :  { %1495 = shalt.err (!%p1492_p4)
}
 0x137   :  { %1333 = dma.vmem_to_hbm [thread:$0]  %s1331_s8, 256, %s2260_s2, [#allocation4]  }
 0x138   :  { %1500 = dma.done.wait [#allocation4], 256  }
 0x139   :  { %1501 = vsyncadd [#allocation4], 4294967040 }
 0x13a   :  { %1337 = vsyncpa [#allocation3], 1 }
 0x13b   :  { %1338 = vsyncpa [#allocation4], 1 }
 0x13c   :  { %1339 = vsyncpa [#allocation5], 1 }

</bundles_post_ra>
